<compile_context>
chip_gen: v7x
topology: tpu7x:2x2x1
jax: 0.10.0
libtpu: 0.0.40
codegen_flags: <defaults>
</compile_context>

<pallas_src>
import jax
import jax.numpy as jnp
import numpy as np
from jax.experimental import pallas as pl
from jax.experimental.pallas import tpu as pltpu


# ---------------------------------------------------------------------------
# Parameter setup (plain numpy glue, cached device-side)
# ---------------------------------------------------------------------------

# Standard JPEG (Annex K) quantization tables.
_Q_LUMA = np.array(
    [[16, 11, 10, 16, 24, 40, 51, 61],
     [12, 12, 14, 19, 26, 58, 60, 55],
     [14, 13, 16, 24, 40, 57, 69, 56],
     [14, 17, 22, 29, 51, 87, 80, 62],
     [18, 22, 37, 56, 68, 109, 103, 77],
     [24, 35, 55, 64, 81, 104, 113, 92],
     [49, 64, 78, 87, 103, 121, 120, 101],
     [72, 92, 95, 98, 112, 100, 103, 99]], dtype=np.float32)

_Q_CHROMA = np.array(
    [[17, 18, 24, 47, 99, 99, 99, 99],
     [18, 21, 26, 66, 99, 99, 99, 99],
     [24, 26, 56, 99, 99, 99, 99, 99],
     [47, 66, 99, 99, 99, 99, 99, 99],
     [99, 99, 99, 99, 99, 99, 99, 99],
     [99, 99, 99, 99, 99, 99, 99, 99],
     [99, 99, 99, 99, 99, 99, 99, 99],
     [99, 99, 99, 99, 99, 99, 99, 99]], dtype=np.float32)


def _dct_matrix(n: int = 8) -> np.ndarray:
    """Orthonormal type-II DCT matrix D such that D @ x is the DCT of x."""
    k = np.arange(n)[:, None].astype(np.float64)
    m = np.arange(n)[None, :].astype(np.float64)
    d = np.cos((2.0 * m + 1.0) * k * np.pi / (2.0 * n))
    d *= np.sqrt(2.0 / n)
    d[0, :] *= np.sqrt(0.5)
    return d.astype(np.float32)


def _scaled_quant_tables(quality: int):
    """libjpeg-style quality scaling of the base quantization tables."""
    q = int(np.clip(quality, 1, 100))
    scale = 5000.0 / q if q < 50 else 200.0 - 2.0 * q

    def scale_tbl(t):
        s = np.floor((t * scale + 50.0) / 100.0)
        return np.clip(s, 1.0, 255.0).astype(np.float32)

    return scale_tbl(_Q_LUMA), scale_tbl(_Q_CHROMA)


# Tile-size preferences.  Row tile caps the row-DCT block-diagonal at 128 (MXU-native,
# limits wasted FLOPs, friendly to v5e); lane tile prefers multiples of 128 so output
# stores are unmasked (256 preferred to amortize per-grid-step overhead).
_H_TILE_PREFS = (128, 64, 32, 16, 8)
_W_TILE_PREFS = (256, 128, 512, 384)


def _pick_tile(n: int, prefs) -> int:
    for t in prefs:
        if t <= n and n % t == 0:
            return t
    return n   # fall back to the full extent (block == full dim is always legal)


_DCT_CACHE = {}     # T -> jnp (2, T, T): [0] = kron(I, d8), [1] = its transpose
_QTBL_CACHE = {}    # (TH, TW, quality) -> jnp (2, 3*TH, TW): [0] = q, [1] = 1/q


def _get_dct(t: int):
    arr = _DCT_CACHE.get(t)
    if arr is None:
        d = np.kron(np.eye(t // 8, dtype=np.float32), _dct_matrix(8)).astype(np.float32)
        arr = jnp.asarray(np.stack([d, d.T], axis=0))
        _DCT_CACHE[t] = arr
    return arr


def _get_qtables(th: int, tw: int, quality: int):
    key = (th, tw, int(quality))
    arr = _QTBL_CACHE.get(key)
    if arr is None:
        ql, qc = _scaled_quant_tables(quality)
        ql_t = np.tile(ql, (th // 8, tw // 8))
        qc_t = np.tile(qc, (th // 8, tw // 8))
        q = np.concatenate([ql_t, qc_t, qc_t], axis=0)          # (3*TH, TW): [Y; Cb; Cr]
        arr = jnp.asarray(np.stack([q, 1.0 / q], axis=0))       # (2, 3*TH, TW)
        _QTBL_CACHE[key] = arr
    return arr


# ---------------------------------------------------------------------------
# Pallas kernel: one (1, 3, TH, TW) tile per grid step
# ---------------------------------------------------------------------------

def _jpeg_kernel(x_ref, dh_ref, dw_ref, q_ref, o_ref):
    # x_ref : (1, 3, TH, TW)  RGB tile
    # dh_ref: (2, TH, TH)     [0] = Dh (block-diag 8x8 DCT over rows), [1] = Dh^T
    # dw_ref: (2, TW, TW)     [0] = Dw (block-diag 8x8 DCT over cols), [1] = Dw^T
    # q_ref : (2, 3*TH, TW)   [0] = [qY; qC; qC] tiled, [1] = its reciprocal
    # o_ref : (1, 3, TH, TW)
    th = dh_ref.shape[-1]

    r = jnp.clip(x_ref[0, 0].astype(jnp.float32), 0.0, 1.0) * 255.0
    g = jnp.clip(x_ref[0, 1].astype(jnp.float32), 0.0, 1.0) * 255.0
    b = jnp.clip(x_ref[0, 2].astype(jnp.float32), 0.0, 1.0) * 255.0

    # RGB -> YCbCr (JFIF / BT.601 full range), already level-shifted by -128 for the
    # DCT (the +128 on Cb/Cr and the -128 block level shift cancel).
    y = 0.299 * r + 0.587 * g + 0.114 * b - 128.0
    cb = -0.168736 * r - 0.331264 * g + 0.5 * b
    cr = 0.5 * r - 0.418688 * g - 0.081312 * b

    dh, dht = dh_ref[0], dh_ref[1]
    dw, dwt = dw_ref[0], dw_ref[1]

    # Row (sublane-axis) blockwise DCT per plane.
    ty = jnp.dot(dh, y, preferred_element_type=jnp.float32)
    tcb = jnp.dot(dh, cb, preferred_element_type=jnp.float32)
    tcr = jnp.dot(dh, cr, preferred_element_type=jnp.float32)

    # Stack the planes along sublanes so the column DCT/IDCT and the quantization run
    # fused: one MXU weight load per stage for all three planes, no wasted FLOPs.
    t = jnp.concatenate([ty, tcb, tcr], axis=0)                   # (3*TH, TW)
    coef = jnp.dot(t, dwt, preferred_element_type=jnp.float32)    # column DCT

    # Quantize / dequantize: multiply by the precomputed reciprocal table (no divide),
    # round half away from zero (libjpeg behaviour).
    q, qinv = q_ref[0], q_ref[1]
    s = coef * qinv
    rounded = jnp.where(s >= 0.0, jnp.floor(s + 0.5), jnp.ceil(s - 0.5))
    deq = rounded * q

    t2 = jnp.dot(deq, dw, preferred_element_type=jnp.float32)     # column IDCT

    # Row IDCT per plane (the +128 level shift is folded into the Y plane only).
    y2 = jnp.dot(dht, t2[0:th], preferred_element_type=jnp.float32) + 128.0
    cb2 = jnp.dot(dht, t2[th:2 * th], preferred_element_type=jnp.float32)
    cr2 = jnp.dot(dht, t2[2 * th:3 * th], preferred_element_type=jnp.float32)

    # YCbCr -> RGB; write each channel directly (no stacked (3,TH,TW) temp).
    inv255 = 1.0 / 255.0
    r2 = (y2 + 1.402 * cr2) * inv255
    g2 = (y2 - 0.344136 * cb2 - 0.714136 * cr2) * inv255
    b2 = (y2 + 1.772 * cb2) * inv255
    o_ref[0, 0] = jnp.clip(r2, 0.0, 1.0).astype(o_ref.dtype)
    o_ref[0, 1] = jnp.clip(g2, 0.0, 1.0).astype(o_ref.dtype)
    o_ref[0, 2] = jnp.clip(b2, 0.0, 1.0).astype(o_ref.dtype)


# ---------------------------------------------------------------------------
# Wrapper (the JPEG.forward equivalent)
# ---------------------------------------------------------------------------

class JPEGPallas:
    def __init__(self, min_quality=None, max_quality=None, passthrough=True):
        self.min_quality = min_quality
        self.max_quality = max_quality
        self.passthrough = passthrough

    def get_random_quality(self, key=None):
        # Host-side integer by design (mirrors torch's .item()): quality parametrizes the
        # host-built quantization tables, so it cannot be a traced value.
        if self.min_quality is None or self.max_quality is None:
            raise ValueError('Quality range must be specified')
        key = key if key is not None else jax.random.PRNGKey(0)
        return int(jax.random.randint(
            key, (1,), self.min_quality, self.max_quality + 1)[0])

    def _compress(self, clamped, quality):
        B, C, H, W = clamped.shape
        th = _pick_tile(H, _H_TILE_PREFS)
        tw = _pick_tile(W, _W_TILE_PREFS)

        dh = _get_dct(th)
        dw = _get_dct(tw)
        qtbl = _get_qtables(th, tw, quality)

        grid = (B, H // th, W // tw)
        return pl.pallas_call(
            _jpeg_kernel,
            out_shape=jax.ShapeDtypeStruct((B, C, H, W), clamped.dtype),
            grid_spec=pltpu.PrefetchScalarGridSpec(
                num_scalar_prefetch=0,
                grid=grid,
                in_specs=[
                    pl.BlockSpec((1, C, th, tw), lambda b, i, j: (b, 0, i, j)),
                    pl.BlockSpec((2, th, th), lambda b, i, j: (0, 0, 0)),
                    pl.BlockSpec((2, tw, tw), lambda b, i, j: (0, 0, 0)),
                    pl.BlockSpec((2, 3 * th, tw), lambda b, i, j: (0, 0, 0)),
                ],
                out_specs=pl.BlockSpec((1, C, th, tw), lambda b, i, j: (b, 0, i, j)),
            ),
            compiler_params=pltpu.CompilerParams(
                dimension_semantics=("parallel", "parallel", "parallel"),
                vmem_limit_bytes=32 * 1024 * 1024),
        )(clamped, dh, dw, qtbl)

    def __call__(self, image, mask, quality=None, key=None):
        if quality is None:
            quality = self.get_random_quality(key)

        squeeze = False
        if image.ndim == 3:                 # single image (C, H, W)
            image = image[None]
            squeeze = True

        B, C, H, W = image.shape
        assert C == 3, "JPEG expects RGB images"
        assert H % 8 == 0 and W % 8 == 0, "H, W must be multiples of 8"

        clamped = jnp.clip(image, 0.0, 1.0)
        compressed = self._compress(clamped, quality)

        if self.passthrough:
            # Straight-through estimator: forward value == compressed, gradient == identity
            # through the clamp (same as torch's `(jpeg(x) - x).detach() + x`).
            out = clamped + jax.lax.stop_gradient(compressed - clamped)
        else:
            out = compressed

        if squeeze:
            out = out[0]
        return out, mask


# ---------------------------------------------------------------------------
# Demo
# ---------------------------------------------------------------------------

if __name__ == "__main__":
    key = jax.random.PRNGKey(0)
    k_img, k_mask = jax.random.split(key)

    B, C, H, W = 2, 3, 32, 512          # NCHW; W=512 exercises the spatial tiling (TW=256)
    image = jax.random.uniform(k_img, (B, C, H, W), dtype=jnp.float32,
                               minval=-0.1, maxval=1.1)   # exercise the clamp
    mask = jax.random.uniform(k_mask, (B, 1, H, W), dtype=jnp.float32)

    jpeg = JPEGPallas(min_quality=40, max_quality=80, passthrough=True)
    out_img, out_mask = jpeg(image, mask, quality=50)
    jax.block_until_ready(out_img)
    jax.block_until_ready(out_mask)

    assert out_img.shape == image.shape and out_img.dtype == image.dtype
    assert out_mask.shape == mask.shape
    # (tiny tolerance: the straight-through add/sub can introduce ~1 ulp around 0/1)
    assert bool(jnp.all(out_img >= -1e-5)) and bool(jnp.all(out_img <= 1.0 + 1e-5))
    assert bool(jnp.all(jnp.isfinite(out_img)))
    print("KERNEL_OK")
</pallas_src>

<mosaic_0001>
module attributes {stable_mosaic.version = 11 : i64} {
  func.func @_jpeg_kernel(%arg0: i32, %arg1: i32, %arg2: i32, %arg3: memref<1x3x32x256xf32, #tpu.memory_space<vmem>>, %arg4: memref<2x32x32xf32, #tpu.memory_space<vmem>>, %arg5: memref<2x256x256xf32, #tpu.memory_space<vmem>>, %arg6: memref<2x96x256xf32, #tpu.memory_space<vmem>>, %arg7: memref<1x3x32x256xf32, #tpu.memory_space<vmem>>) attributes {dimension_semantics = [#tpu.dimension_semantics<parallel>, #tpu.dimension_semantics<parallel>, #tpu.dimension_semantics<parallel>], iteration_bounds = array<i64: 2, 1, 2>, scalar_prefetch = 0 : i64, scratch_operands = 0 : i64, tpu.core_type = #tpu.core_type<tc>, window_params = [{transform_indices = @transform_0, window_bounds = array<i64: 1, 3, 32, 256>}, {pipeline_mode = #tpu.pipeline_mode<synchronous>, transform_indices = @transform_1, window_bounds = array<i64: 2, 32, 32>}, {pipeline_mode = #tpu.pipeline_mode<synchronous>, transform_indices = @transform_2, window_bounds = array<i64: 2, 256, 256>}, {pipeline_mode = #tpu.pipeline_mode<synchronous>, transform_indices = @transform_3, window_bounds = array<i64: 2, 96, 256>}, {transform_indices = @transform_4, window_bounds = array<i64: 1, 3, 32, 256>}]} {
    %c0 = arith.constant 0 : index
    %c0_0 = arith.constant 0 : index
    %c0_1 = arith.constant 0 : index
    %c0_2 = arith.constant 0 : index
    %0 = vector.load %arg3[%c0, %c0_0, %c0_1, %c0_2] : memref<1x3x32x256xf32, #tpu.memory_space<vmem>>, vector<1x1x32x256xf32>
    %1 = vector.shape_cast %0 : vector<1x1x32x256xf32> to vector<32x256xf32>
    %cst = arith.constant 0.000000e+00 : f32
    %cst_3 = arith.constant 1.000000e+00 : f32
    %2 = vector.broadcast %cst : f32 to vector<32x256xf32>
    %3 = arith.maximumf %2, %1 : vector<32x256xf32>
    %4 = vector.broadcast %cst_3 : f32 to vector<32x256xf32>
    %5 = arith.minimumf %4, %3 : vector<32x256xf32>
    %cst_4 = arith.constant 2.550000e+02 : f32
    %6 = vector.broadcast %cst_4 : f32 to vector<32x256xf32>
    %7 = arith.mulf %5, %6 : vector<32x256xf32>
    %c0_5 = arith.constant 0 : index
    %c1 = arith.constant 1 : index
    %c0_6 = arith.constant 0 : index
    %c0_7 = arith.constant 0 : index
    %8 = vector.load %arg3[%c0_5, %c1, %c0_6, %c0_7] : memref<1x3x32x256xf32, #tpu.memory_space<vmem>>, vector<1x1x32x256xf32>
    %9 = vector.shape_cast %8 : vector<1x1x32x256xf32> to vector<32x256xf32>
    %cst_8 = arith.constant 0.000000e+00 : f32
    %cst_9 = arith.constant 1.000000e+00 : f32
    %10 = vector.broadcast %cst_8 : f32 to vector<32x256xf32>
    %11 = arith.maximumf %10, %9 : vector<32x256xf32>
    %12 = vector.broadcast %cst_9 : f32 to vector<32x256xf32>
    %13 = arith.minimumf %12, %11 : vector<32x256xf32>
    %cst_10 = arith.constant 2.550000e+02 : f32
    %14 = vector.broadcast %cst_10 : f32 to vector<32x256xf32>
    %15 = arith.mulf %13, %14 : vector<32x256xf32>
    %c0_11 = arith.constant 0 : index
    %c2 = arith.constant 2 : index
    %c0_12 = arith.constant 0 : index
    %c0_13 = arith.constant 0 : index
    %16 = vector.load %arg3[%c0_11, %c2, %c0_12, %c0_13] : memref<1x3x32x256xf32, #tpu.memory_space<vmem>>, vector<1x1x32x256xf32>
    %17 = vector.shape_cast %16 : vector<1x1x32x256xf32> to vector<32x256xf32>
    %cst_14 = arith.constant 0.000000e+00 : f32
    %cst_15 = arith.constant 1.000000e+00 : f32
    %18 = vector.broadcast %cst_14 : f32 to vector<32x256xf32>
    %19 = arith.maximumf %18, %17 : vector<32x256xf32>
    %20 = vector.broadcast %cst_15 : f32 to vector<32x256xf32>
    %21 = arith.minimumf %20, %19 : vector<32x256xf32>
    %cst_16 = arith.constant 2.550000e+02 : f32
    %22 = vector.broadcast %cst_16 : f32 to vector<32x256xf32>
    %23 = arith.mulf %21, %22 : vector<32x256xf32>
    %cst_17 = arith.constant 2.990000e-01 : f32
    %24 = vector.broadcast %cst_17 : f32 to vector<32x256xf32>
    %25 = arith.mulf %24, %7 : vector<32x256xf32>
    %cst_18 = arith.constant 5.870000e-01 : f32
    %26 = vector.broadcast %cst_18 : f32 to vector<32x256xf32>
    %27 = arith.mulf %26, %15 : vector<32x256xf32>
    %28 = arith.addf %25, %27 : vector<32x256xf32>
    %cst_19 = arith.constant 1.140000e-01 : f32
    %29 = vector.broadcast %cst_19 : f32 to vector<32x256xf32>
    %30 = arith.mulf %29, %23 : vector<32x256xf32>
    %31 = arith.addf %28, %30 : vector<32x256xf32>
    %cst_20 = arith.constant 1.280000e+02 : f32
    %32 = vector.broadcast %cst_20 : f32 to vector<32x256xf32>
    %33 = arith.subf %31, %32 : vector<32x256xf32>
    %cst_21 = arith.constant -1.687360e-01 : f32
    %34 = vector.broadcast %cst_21 : f32 to vector<32x256xf32>
    %35 = arith.mulf %34, %7 : vector<32x256xf32>
    %cst_22 = arith.constant 3.312640e-01 : f32
    %36 = vector.broadcast %cst_22 : f32 to vector<32x256xf32>
    %37 = arith.mulf %36, %15 : vector<32x256xf32>
    %38 = arith.subf %35, %37 : vector<32x256xf32>
    %cst_23 = arith.constant 5.000000e-01 : f32
    %39 = vector.broadcast %cst_23 : f32 to vector<32x256xf32>
    %40 = arith.mulf %39, %23 : vector<32x256xf32>
    %41 = arith.addf %38, %40 : vector<32x256xf32>
    %cst_24 = arith.constant 5.000000e-01 : f32
    %42 = vector.broadcast %cst_24 : f32 to vector<32x256xf32>
    %43 = arith.mulf %42, %7 : vector<32x256xf32>
    %cst_25 = arith.constant 4.186880e-01 : f32
    %44 = vector.broadcast %cst_25 : f32 to vector<32x256xf32>
    %45 = arith.mulf %44, %15 : vector<32x256xf32>
    %46 = arith.subf %43, %45 : vector<32x256xf32>
    %cst_26 = arith.constant 8.131200e-02 : f32
    %47 = vector.broadcast %cst_26 : f32 to vector<32x256xf32>
    %48 = arith.mulf %47, %23 : vector<32x256xf32>
    %49 = arith.subf %46, %48 : vector<32x256xf32>
    %c0_27 = arith.constant 0 : index
    %c0_28 = arith.constant 0 : index
    %c0_29 = arith.constant 0 : index
    %50 = vector.load %arg4[%c0_27, %c0_28, %c0_29] : memref<2x32x32xf32, #tpu.memory_space<vmem>>, vector<1x32x32xf32>
    %51 = vector.shape_cast %50 : vector<1x32x32xf32> to vector<32x32xf32>
    %c1_30 = arith.constant 1 : index
    %c0_31 = arith.constant 0 : index
    %c0_32 = arith.constant 0 : index
    %52 = vector.load %arg4[%c1_30, %c0_31, %c0_32] : memref<2x32x32xf32, #tpu.memory_space<vmem>>, vector<1x32x32xf32>
    %53 = vector.shape_cast %52 : vector<1x32x32xf32> to vector<32x32xf32>
    %c0_33 = arith.constant 0 : index
    %c0_34 = arith.constant 0 : index
    %c0_35 = arith.constant 0 : index
    %54 = vector.load %arg5[%c0_33, %c0_34, %c0_35] : memref<2x256x256xf32, #tpu.memory_space<vmem>>, vector<1x256x256xf32>
    %55 = vector.shape_cast %54 : vector<1x256x256xf32> to vector<256x256xf32>
    %c1_36 = arith.constant 1 : index
    %c0_37 = arith.constant 0 : index
    %c0_38 = arith.constant 0 : index
    %56 = vector.load %arg5[%c1_36, %c0_37, %c0_38] : memref<2x256x256xf32, #tpu.memory_space<vmem>>, vector<1x256x256xf32>
    %57 = vector.shape_cast %56 : vector<1x256x256xf32> to vector<256x256xf32>
    %cst_39 = arith.constant dense<0.000000e+00> : vector<32x256xf32>
    %58 = tpu.matmul %51, %33, %cst_39 {dimension_numbers = #tpu.dot_dimension_numbers<[1], [0], [0], [1], [0, 0, 1, 1], [], []>} : vector<32x32xf32>, vector<32x256xf32>, vector<32x256xf32> -> vector<32x256xf32>
    %cst_40 = arith.constant dense<0.000000e+00> : vector<32x256xf32>
    %59 = tpu.matmul %51, %41, %cst_40 {dimension_numbers = #tpu.dot_dimension_numbers<[1], [0], [0], [1], [0, 0, 1, 1], [], []>} : vector<32x32xf32>, vector<32x256xf32>, vector<32x256xf32> -> vector<32x256xf32>
    %cst_41 = arith.constant dense<0.000000e+00> : vector<32x256xf32>
    %60 = tpu.matmul %51, %49, %cst_41 {dimension_numbers = #tpu.dot_dimension_numbers<[1], [0], [0], [1], [0, 0, 1, 1], [], []>} : vector<32x32xf32>, vector<32x256xf32>, vector<32x256xf32> -> vector<32x256xf32>
    %61 = tpu.concatenate %58, %59, %60 in 0 : vector<32x256xf32>, vector<32x256xf32>, vector<32x256xf32> -> vector<96x256xf32>
    %cst_42 = arith.constant dense<0.000000e+00> : vector<96x256xf32>
    %62 = tpu.matmul %61, %57, %cst_42 {dimension_numbers = #tpu.dot_dimension_numbers<[1], [0], [0], [1], [0, 0, 1, 1], [], []>} : vector<96x256xf32>, vector<256x256xf32>, vector<96x256xf32> -> vector<96x256xf32>
    %c0_43 = arith.constant 0 : index
    %c0_44 = arith.constant 0 : index
    %c0_45 = arith.constant 0 : index
    %63 = vector.load %arg6[%c0_43, %c0_44, %c0_45] : memref<2x96x256xf32, #tpu.memory_space<vmem>>, vector<1x96x256xf32>
    %64 = vector.shape_cast %63 : vector<1x96x256xf32> to vector<96x256xf32>
    %c1_46 = arith.constant 1 : index
    %c0_47 = arith.constant 0 : index
    %c0_48 = arith.constant 0 : index
    %65 = vector.load %arg6[%c1_46, %c0_47, %c0_48] : memref<2x96x256xf32, #tpu.memory_space<vmem>>, vector<1x96x256xf32>
    %66 = vector.shape_cast %65 : vector<1x96x256xf32> to vector<96x256xf32>
    %67 = arith.mulf %62, %66 : vector<96x256xf32>
    %cst_49 = arith.constant 0.000000e+00 : f32
    %68 = vector.broadcast %cst_49 : f32 to vector<96x256xf32>
    %69 = arith.cmpf oge, %67, %68 : vector<96x256xf32>
    %cst_50 = arith.constant 5.000000e-01 : f32
    %70 = vector.broadcast %cst_50 : f32 to vector<96x256xf32>
    %71 = arith.addf %67, %70 : vector<96x256xf32>
    %72 = math.floor %71 : vector<96x256xf32>
    %cst_51 = arith.constant 5.000000e-01 : f32
    %73 = vector.broadcast %cst_51 : f32 to vector<96x256xf32>
    %74 = arith.subf %67, %73 : vector<96x256xf32>
    %75 = math.ceil %74 : vector<96x256xf32>
    %76 = arith.select %69, %72, %75 : vector<96x256xi1>, vector<96x256xf32>
    %77 = arith.mulf %76, %64 : vector<96x256xf32>
    %cst_52 = arith.constant dense<0.000000e+00> : vector<96x256xf32>
    %78 = tpu.matmul %77, %55, %cst_52 {dimension_numbers = #tpu.dot_dimension_numbers<[1], [0], [0], [1], [0, 0, 1, 1], [], []>} : vector<96x256xf32>, vector<256x256xf32>, vector<96x256xf32> -> vector<96x256xf32>
    %79 = vector.extract_strided_slice %78 {offsets = [0, 0], sizes = [32, 256], strides = [1, 1]} : vector<96x256xf32> to vector<32x256xf32>
    %cst_53 = arith.constant dense<0.000000e+00> : vector<32x256xf32>
    %80 = tpu.matmul %53, %79, %cst_53 {dimension_numbers = #tpu.dot_dimension_numbers<[1], [0], [0], [1], [0, 0, 1, 1], [], []>} : vector<32x32xf32>, vector<32x256xf32>, vector<32x256xf32> -> vector<32x256xf32>
    %cst_54 = arith.constant 1.280000e+02 : f32
    %81 = vector.broadcast %cst_54 : f32 to vector<32x256xf32>
    %82 = arith.addf %80, %81 : vector<32x256xf32>
    %83 = vector.extract_strided_slice %78 {offsets = [32, 0], sizes = [32, 256], strides = [1, 1]} : vector<96x256xf32> to vector<32x256xf32>
    %cst_55 = arith.constant dense<0.000000e+00> : vector<32x256xf32>
    %84 = tpu.matmul %53, %83, %cst_55 {dimension_numbers = #tpu.dot_dimension_numbers<[1], [0], [0], [1], [0, 0, 1, 1], [], []>} : vector<32x32xf32>, vector<32x256xf32>, vector<32x256xf32> -> vector<32x256xf32>
    %85 = vector.extract_strided_slice %78 {offsets = [64, 0], sizes = [32, 256], strides = [1, 1]} : vector<96x256xf32> to vector<32x256xf32>
    %cst_56 = arith.constant dense<0.000000e+00> : vector<32x256xf32>
    %86 = tpu.matmul %53, %85, %cst_56 {dimension_numbers = #tpu.dot_dimension_numbers<[1], [0], [0], [1], [0, 0, 1, 1], [], []>} : vector<32x32xf32>, vector<32x256xf32>, vector<32x256xf32> -> vector<32x256xf32>
    %cst_57 = arith.constant 1.402000e+00 : f32
    %87 = vector.broadcast %cst_57 : f32 to vector<32x256xf32>
    %88 = arith.mulf %87, %86 : vector<32x256xf32>
    %89 = arith.addf %82, %88 : vector<32x256xf32>
    %cst_58 = arith.constant 0.00392156886 : f32
    %90 = vector.broadcast %cst_58 : f32 to vector<32x256xf32>
    %91 = arith.mulf %89, %90 : vector<32x256xf32>
    %cst_59 = arith.constant 3.441360e-01 : f32
    %92 = vector.broadcast %cst_59 : f32 to vector<32x256xf32>
    %93 = arith.mulf %92, %84 : vector<32x256xf32>
    %94 = arith.subf %82, %93 : vector<32x256xf32>
    %cst_60 = arith.constant 7.141360e-01 : f32
    %95 = vector.broadcast %cst_60 : f32 to vector<32x256xf32>
    %96 = arith.mulf %95, %86 : vector<32x256xf32>
    %97 = arith.subf %94, %96 : vector<32x256xf32>
    %cst_61 = arith.constant 0.00392156886 : f32
    %98 = vector.broadcast %cst_61 : f32 to vector<32x256xf32>
    %99 = arith.mulf %97, %98 : vector<32x256xf32>
    %cst_62 = arith.constant 1.772000e+00 : f32
    %100 = vector.broadcast %cst_62 : f32 to vector<32x256xf32>
    %101 = arith.mulf %100, %84 : vector<32x256xf32>
    %102 = arith.addf %82, %101 : vector<32x256xf32>
    %cst_63 = arith.constant 0.00392156886 : f32
    %103 = vector.broadcast %cst_63 : f32 to vector<32x256xf32>
    %104 = arith.mulf %102, %103 : vector<32x256xf32>
    %cst_64 = arith.constant 0.000000e+00 : f32
    %cst_65 = arith.constant 1.000000e+00 : f32
    %105 = vector.broadcast %cst_64 : f32 to vector<32x256xf32>
    %106 = arith.maximumf %105, %91 : vector<32x256xf32>
    %107 = vector.broadcast %cst_65 : f32 to vector<32x256xf32>
    %108 = arith.minimumf %107, %106 : vector<32x256xf32>
    %c0_66 = arith.constant 0 : index
    %c0_67 = arith.constant 0 : index
    %c0_68 = arith.constant 0 : index
    %c0_69 = arith.constant 0 : index
    %109 = vector.load %arg7[%c0_66, %c0_67, %c0_68, %c0_69] : memref<1x3x32x256xf32, #tpu.memory_space<vmem>>, vector<1x1x32x256xf32>
    %110 = vector.shape_cast %109 : vector<1x1x32x256xf32> to vector<32x256xf32>
    %111 = vector.shape_cast %108 : vector<32x256xf32> to vector<1x1x32x256xf32>
    tpu.vector_store %arg7[%c0_66, %c0_67, %c0_68, %c0_69], %111 {strides = array<i32>} : memref<1x3x32x256xf32, #tpu.memory_space<vmem>>, vector<1x1x32x256xf32>,
    %cst_70 = arith.constant 0.000000e+00 : f32
    %cst_71 = arith.constant 1.000000e+00 : f32
    %112 = vector.broadcast %cst_70 : f32 to vector<32x256xf32>
    %113 = arith.maximumf %112, %99 : vector<32x256xf32>
    %114 = vector.broadcast %cst_71 : f32 to vector<32x256xf32>
    %115 = arith.minimumf %114, %113 : vector<32x256xf32>
    %c0_72 = arith.constant 0 : index
    %c1_73 = arith.constant 1 : index
    %c0_74 = arith.constant 0 : index
    %c0_75 = arith.constant 0 : index
    %116 = vector.load %arg7[%c0_72, %c1_73, %c0_74, %c0_75] : memref<1x3x32x256xf32, #tpu.memory_space<vmem>>, vector<1x1x32x256xf32>
    %117 = vector.shape_cast %116 : vector<1x1x32x256xf32> to vector<32x256xf32>
    %118 = vector.shape_cast %115 : vector<32x256xf32> to vector<1x1x32x256xf32>
    tpu.vector_store %arg7[%c0_72, %c1_73, %c0_74, %c0_75], %118 {strides = array<i32>} : memref<1x3x32x256xf32, #tpu.memory_space<vmem>>, vector<1x1x32x256xf32>,
    %cst_76 = arith.constant 0.000000e+00 : f32
    %cst_77 = arith.constant 1.000000e+00 : f32
    %119 = vector.broadcast %cst_76 : f32 to vector<32x256xf32>
    %120 = arith.maximumf %119, %104 : vector<32x256xf32>
    %121 = vector.broadcast %cst_77 : f32 to vector<32x256xf32>
    %122 = arith.minimumf %121, %120 : vector<32x256xf32>
    %c0_78 = arith.constant 0 : index
    %c2_79 = arith.constant 2 : index
    %c0_80 = arith.constant 0 : index
    %c0_81 = arith.constant 0 : index
    %123 = vector.load %arg7[%c0_78, %c2_79, %c0_80, %c0_81] : memref<1x3x32x256xf32, #tpu.memory_space<vmem>>, vector<1x1x32x256xf32>
    %124 = vector.shape_cast %123 : vector<1x1x32x256xf32> to vector<32x256xf32>
    %125 = vector.shape_cast %122 : vector<32x256xf32> to vector<1x1x32x256xf32>
    tpu.vector_store %arg7[%c0_78, %c2_79, %c0_80, %c0_81], %125 {strides = array<i32>} : memref<1x3x32x256xf32, #tpu.memory_space<vmem>>, vector<1x1x32x256xf32>,
    return
  }
  func.func @transform_0(%arg0: i32, %arg1: i32, %arg2: i32) -> (i32, i32, i32, i32) {
    %c0_i32 = arith.constant 0 : i32
    %c0_i32_0 = arith.constant 0 : i32
    return %arg0, %c0_i32, %arg1, %arg2 : i32, i32, i32, i32
  }
  func.func @transform_1(%arg0: i32, %arg1: i32, %arg2: i32) -> (i32, i32, i32) {
    %c0_i32 = arith.constant 0 : i32
    %c0_i32_0 = arith.constant 0 : i32
    %c0_i32_1 = arith.constant 0 : i32
    %c0_i32_2 = arith.constant 0 : i32
    return %c0_i32, %c0_i32_0, %c0_i32_1 : i32, i32, i32
  }
  func.func @transform_2(%arg0: i32, %arg1: i32, %arg2: i32) -> (i32, i32, i32) {
    %c0_i32 = arith.constant 0 : i32
    %c0_i32_0 = arith.constant 0 : i32
    %c0_i32_1 = arith.constant 0 : i32
    %c0_i32_2 = arith.constant 0 : i32
    return %c0_i32, %c0_i32_0, %c0_i32_1 : i32, i32, i32
  }
  func.func @transform_3(%arg0: i32, %arg1: i32, %arg2: i32) -> (i32, i32, i32) {
    %c0_i32 = arith.constant 0 : i32
    %c0_i32_0 = arith.constant 0 : i32
    %c0_i32_1 = arith.constant 0 : i32
    %c0_i32_2 = arith.constant 0 : i32
    return %c0_i32, %c0_i32_0, %c0_i32_1 : i32, i32, i32
  }
  func.func @transform_4(%arg0: i32, %arg1: i32, %arg2: i32) -> (i32, i32, i32, i32) {
    %c0_i32 = arith.constant 0 : i32
    %c0_i32_0 = arith.constant 0 : i32
    return %arg0, %c0_i32, %arg1, %arg2 : i32, i32, i32, i32
  }
}

</mosaic_0001>

<bundles_post_ra>
// kernel: tpu_custom_call.1
= control target key start
LH: loop header
LB: loop body
LE: loop exit
PB: predicated region body
PF: predicated region fallthrough
CT: control target
= control target key end

     0   :  { %s3362_s0 = inlined_call_operand.hbm [shape: f32[2,3,32,512], index: 0, kind: input, shape index: {}]   ;;  %s3363_s1 = inlined_call_operand.hbm [shape: f32[2,32,32], index: 1, kind: input, shape index: {}]   ;;  %s3364_s2 = inlined_call_operand.hbm [shape: f32[2,256,256], index: 2, kind: input, shape index: {}]   ;;  %s3365_s3 = inlined_call_operand.hbm [shape: f32[2,96,256], index: 3, kind: input, shape index: {}]   ;;  %s3366_s4 = inlined_call_operand.hbm [shape: f32[2,3,32,512], index: 4, kind: output, shape index: {}]  }
   0x1   :  { %3379 = sst [smem:[#allocation18_spill]] %s3363_s1 }
   0x2   :  { %9 = vsyncpa [#allocation3], 0 }
   0x3   :  { %11 = vsyncpa [#allocation3 + $0x1], 0 }
   0x4   :  { %12 = vsyncpa [#allocation6], 0 }
   0x5   :  { %13 = vsyncpa [#allocation9], 0 }
   0x6   :  { %14 = vsyncpa [#allocation4], 0 }
   0x7   :  { %16 = vsyncpa [#allocation4 + $0x1], 0  ;;  %s2705_s15 = smov 0   ;;  %s2707_s16 = smov 0  }
   0x8   :  { %s2709_s17 = smov 0   ;;  %s2711_s18 = smov 0  }
   0x9   :  { %s2713_s19 = smov 0   ;;  %s2715_s20 = smov 0  }
   0xa   :  { %s2717_s21 = smov 0   ;;  %s2719_s22 = smov 0  }
   0xb LB: > { %3380 = sst [smem:[#allocation15_spill]] %s2636_s15  ;;  %s2041_s23 = sadd.s32 4294967295, %s2664_s22   ;;  %s2664_s22 = sphi %s2719_s22, %s22_s22   ;;  %s2660_s21 = sphi %s2717_s21, %s3411_s21   ;;  %s2656_s20 = sphi %s2715_s20, %s3410_s20   ;;  %s2652_s19 = sphi %s2713_s19, %s3409_s19   ;;  %s2648_s18 = sphi %s2711_s18, %s3408_s18   ;;  %s2644_s17 = sphi %s2709_s17, %s3407_s17   ;;  %s2640_s16 = sphi %s2707_s16, %s3406_s16   ;;  %s2636_s15 = sphi %s2705_s15, %s3405_s15  }
   0xc   : > { %3381 = sst [smem:[#allocation16_spill]] %s2664_s22  ;;  %s2042_s24 = sadd.s32 4294967294, %s2664_s22  }
   0xd   : > { %p59_p0 = scmp.ne.s32.totalorder %s2644_s17, %s2640_s16  ;;  %p60_p1 = scmp.eq.s32.totalorder %s2664_s22, 0 }
   0xe   : > { %p65_p2 = scmp.ne.s32.totalorder %s2640_s16, %s2636_s15  ;;  %p2753_p3 = scmp.eq.s32.totalorder %s2041_s23, 0 }
   0xf   : > { %p156_p4 = scmp.eq.s32.totalorder %s2041_s23, 3  ;;  %p2757_p5 = por %p60_p1, %p59_p0 }
  0x10   : > { %s3382_s26 = scalar_select %p2753_p3, 1, 0 }
  0x11   : > { %p162_p6 = scmp.eq.s32.totalorder %s2042_s24, 3  ;;  %p2763_p7 = por %p2753_p3, %p65_p2 }
  0x12   : > { %p2767_p8 = por %p156_p4, %p59_p0  ;;  %p2043_p10 = scmp.ge.s32.totalorder %s2664_s22, 1 }
  0x13   : > { %s3384_s28 = scalar_select %p2763_p7, 1, 0 }
  0x14   : > { %s3385_s29 = scalar_select %p2767_p8, 1, 0 }
  0x15   : > { %p2771_p9 = por %p162_p6, %p65_p2  ;;  %p169_p11 = scmp.lt.s32.totalorder %s2664_s22, 5 }
  0x16   : > { %s2666_s6 = smov [#allocation5]   ;;  %p2363_p0 = scmp.lt.s32.totalorder %s2664_s22, 4 }
  0x17   : > { %s3386_s30 = scalar_select %p2771_p9, 1, 0 }
  0x18   : > { %p2777_p12 = pnand %p2043_p10, %p169_p11  ;;  %s181_s7 = sshll.u32 %s2666_s6, 4  ;;  %s2781_s7 = int_to_ptr.vmem [resolvable:$true] %s181_s7 }
  0x19   : > { %3387 = sst [smem:[#allocation17_spill]] %s3386_s30  ;;  %s2667_s9 = smov [#allocation7]  }
  0x1a   : > { %s3388_s5 = scalar_select %p2777_p12, 1, 0 }
  0x1b   : > { %p2342_p13 = pneg %p2777_p12  ;;  %s194_s10 = sshll.u32 %s2667_s9, 4  ;;  %s2798_s10 = int_to_ptr.vmem [resolvable:$true] %s194_s10 }
  0x1c   : > { %p2794_p2 = pnand %p2363_p0, %p2757_p5  ;;  %s3391_s1 = sld [smem:[#allocation18_spill]] }
  0x1d   : > { %p2788_p1 = pnand %p2342_p13, %p2753_p3 }
  0x1e   : > { %s3390_s11 = scalar_select %p2794_p2, 1, 0 }
  0x1f   : > { %p2808_p6 = pneg %p2788_p1 }
  0x22   : > { %s2444_s14 = scalar_lea.hbm %s3391_s1, 1024 }
  0x23   : > { %p2445_p4 = scmp.ne.s32.totalorder %s3391_s1, %s2444_s14  ;;  %p2451_p11 = scmp.lt.u32.totalorder %s2444_s14, %s3391_s1 }
  0x25   : > { %p2447_p5 = pnand %p2808_p6, %p2445_p4 }
  0x27   : > { %p2448_p10 = pneg %p2447_p5 }
  0x29   : > { %p2453_p13 = pnand %p2451_p11, %p2448_p10 }
  0x2b   : > { %2456 = shalt.err (!%p2453_p13)
}
  0x2c   : > { %s2457_s12 = scalar_lea.vmem %s2781_s7, 1024  ;;  %p2465_p3 = scmp.lt.s32.totalorder %s2781_s7, %s2781_s7 }
  0x2d   : > { %p2458_p0 = scmp.ne.s32.totalorder %s2781_s7, %s2457_s12  ;;  %p2466_p7 = scmp.lt.s32.totalorder %s2457_s12, %s2457_s12 }
  0x2f   : > { %p2460_p9 = pnand %p2458_p0, %p2808_p6  ;;  %p2467_p4 = por %p2466_p7, %p2465_p3 }
  0x31   : > { %p2461_p8 = pneg %p2460_p9 }
  0x33   : > { %p2468_p5 = pnand %p2467_p4, %p2461_p8 }
  0x35   : > { %2471 = shalt.err (!%p2468_p5)
}
  0x36   : > { %s2668_s13 = smov 128   ;;  %s2669_s14 = smov 8  }
  0x37   : > { %2345 = dma.hbm_to_vmem [thread:$0]  (!%p2788_p1), %s3391_s1, 1024, %s2781_s7, [#allocation6], %s2668_s13, %s2668_s13, %s2669_s14  }
  0x38   : > { %s2472_s25 = scalar_lea.hbm %s3364_s2, 16384 }
  0x39   : > { %p2473_p3 = scmp.ne.s32.totalorder %s3364_s2, %s2472_s25  ;;  %p2479_p9 = scmp.lt.u32.totalorder %s2472_s25, %s3364_s2 }
  0x3b   : > { %p2475_p7 = pnand %p2473_p3, %p2808_p6 }
  0x3d   : > { %p2476_p8 = pneg %p2475_p7 }
  0x3f   : > { %p2481_p10 = pnand %p2479_p9, %p2476_p8 }
  0x41   : > { %2484 = shalt.err (!%p2481_p10)
}
  0x42   : > { %s2485_s7 = scalar_lea.vmem %s2798_s10, 16384  ;;  %p2493_p4 = scmp.lt.s32.totalorder %s2798_s10, %s2798_s10 }
  0x43   : > { %p2486_p11 = scmp.ne.s32.totalorder %s2798_s10, %s2485_s7  ;;  %p2494_p5 = scmp.lt.s32.totalorder %s2485_s7, %s2485_s7 }
  0x45   : > { %p2488_p13 = pnand %p2486_p11, %p2808_p6  ;;  %p2495_p3 = por %p2494_p5, %p2493_p4 }
  0x47   : > { %p2489_p0 = pneg %p2488_p13 }
  0x49   : > { %p2496_p7 = pnand %p2495_p3, %p2489_p0 }
  0x4b   : > { %2499 = shalt.err (!%p2496_p7)
}
  0x4c   : > { %s3377_s15 = smov 256   ;;  %s3378_s22 = smov 16  }
  0x4d   : > { %2348 = dma.hbm_to_vmem [thread:$0]  (!%p2788_p1), %s3364_s2, 16384, %s2798_s10, [#allocation6], %s3377_s15, %s3377_s15, %s3378_s22  }
  0x4e   : > { %s2672_s13 = smov [#allocation8]   ;;  %s2500_s27 = scalar_lea.hbm %s3365_s3, 6144 }
  0x4f   : > { %s207_s14 = sshll.u32 %s2672_s13, 4  ;;  %p2501_p8 = scmp.ne.s32.totalorder %s3365_s3, %s2500_s27  ;;  %s208_s14 = int_to_ptr.vmem [resolvable:$true] %s207_s14 }
  0x50   : > { %p2507_p11 = scmp.lt.u32.totalorder %s2500_s27, %s3365_s3 }
  0x51   : > { %p2503_p9 = pnand %p2501_p8, %p2808_p6 }
  0x53   : > { %p2504_p10 = pneg %p2503_p9 }
  0x55   : > { %p2509_p13 = pnand %p2507_p11, %p2504_p10 }
  0x57   : > { %2512 = shalt.err (!%p2509_p13)
}
  0x58   : > { %s2513_s10 = scalar_lea.vmem %s208_s14, 6144  ;;  %p2521_p3 = scmp.lt.s32.totalorder %s208_s14, %s208_s14 }
  0x59   : > { %p2514_p0 = scmp.ne.s32.totalorder %s208_s14, %s2513_s10  ;;  %p2522_p7 = scmp.lt.s32.totalorder %s2513_s10, %s2513_s10 }
  0x5b   : > { %p2516_p4 = pnand %p2514_p0, %p2808_p6  ;;  %p2523_p12 = por %p2522_p7, %p2521_p3 }
  0x5d   : > { %p2517_p5 = pneg %p2516_p4 }
  0x5f   : > { %p2524_p2 = pnand %p2523_p12, %p2517_p5 }
  0x61   : > { %2527 = shalt.err (!%p2524_p2)
}
  0x62   : > { %2351 = dma.hbm_to_vmem [thread:$0]  (!%p2788_p1), %s3365_s3, 6144, %s208_s14, [#allocation9], %s3377_s15, %s3377_s15, %s3378_s22  }
  0x63   : > { %s41_s6 = sadd.s32 1, %s2660_s21  ;;  %s34_s30 = sadd.s32 1, %s2656_s20 }
  0x64   : > { %s221_s13 = sand.u32 1, %s2644_s17   ;;  %p35_p12 = scmp.ge.s32.totalorder %s34_s30, 2 }
  0x65   : > { %s2322_s8 = smul.u32 192, %s221_s13  ;;  %s2048_s23 = sshll.u32 %s2656_s20, 1 }
  0x66   : > { %s3413_s30 = smov (%p35_p12, %s34_s30), 0  ;;  %s3415_s6 = smov (!%p35_p12, %s41_s6), %s2660_s21 }
  0x67   : > { %s48_s24 = ssub.s32 %s2656_s20, %s3413_s30  ;;  %p43_p2 = scmp.ge.s32.totalorder %s3415_s6, 2 }
  0x68   : > { %s2323_s27 = smul.u32 48, %s2660_s21  ;;  %s225_s9 = scalar_lea.vmem [#allocation2], %s2322_s8 }
  0x69   : > { %s237_s12 = sshll.u32 %s225_s9, 4  ;;  %s3417_s6 = smov (%p43_p2, %s3415_s6), 0  ;;  %s2888_s12 = int_to_ptr.vmem [resolvable:$true] %s237_s12 }
  0x6a   : > { %s234_s14 = sadd.s32 %s2323_s27, %s2048_s23  ;;  %s45_s7 = ssub.s32 %s2660_s21, %s3417_s6 }
  0x6b   : > { %s2049_s10 = sshll.u32 %s234_s14, 7  ;;  %s2892_s1 = sor.u32 %s48_s24, %s45_s7 }
  0x6c   : > { %s2897_s22 = scalar_lea.hbm %s3362_s0, %s2049_s10  ;;  %p50_p1 = scmp.eq.s32.totalorder %s2892_s1, 0 }
  0x6d   : > { %s2900_s8 = scalar_lea.sflag [#allocation3], %s221_s13  ;;  %s2528_s23 = scalar_lea.hbm %s2897_s22, 3072 }
  0x6e   : > { %p2529_p6 = scmp.ne.s32.totalorder %s2897_s22, %s2528_s23  ;;  %p3393_p8 = scmp.ne.s32.totalorder %s3390_s11, 0 }
  0x6f   : > { %s2533_s27 = scalar_lea.hbm %s3362_s0, 12288  ;;  %p2534_p13 = scmp.lt.u32.totalorder %s2897_s22, %s3362_s0 }
  0x70   : > { %p2530_p9 = pneg %p3393_p8  ;;  %p2535_p0 = scmp.lt.u32.totalorder %s2533_s27, %s2528_s23 }
  0x71   : > { %p2537_p5 = scmp.lt.u32.totalorder %s2528_s23, %s2897_s22 }
  0x72   : > { %p2531_p10 = pnand %p2530_p9, %p2529_p6  ;;  %p2536_p4 = por %p2535_p0, %p2534_p13 }
  0x74   : > { %p2532_p11 = pneg %p2531_p10  ;;  %p2538_p3 = por %p2537_p5, %p2536_p4 }
  0x76   : > { %p2539_p7 = pnand %p2538_p3, %p2532_p11 }
  0x78   : > { %2542 = shalt.err (!%p2539_p7)
}
  0x79   : > { %s2543_s13 = scalar_lea.vmem %s2888_s12, 3072  ;;  %s2673_s7 = smov [#allocation2]  }
  0x7a   : > { %p2544_p12 = scmp.ne.s32.totalorder %s2888_s12, %s2543_s13  ;;  %s2548_s10 = sshll.u32 %s2673_s7, 4  ;;  %s2549_s10 = int_to_ptr.vmem [resolvable:$false] %s2548_s10 }
  0x7b   : > { %s2550_s25 = scalar_lea.vmem %s2549_s10, 6144  ;;  %p2551_p10 = scmp.lt.s32.totalorder %s2888_s12, %s2549_s10 }
  0x7c   : > { %p2546_p2 = pnand %p2544_p12, %p2530_p9  ;;  %p2552_p13 = scmp.lt.s32.totalorder %s2550_s25, %s2543_s13 }
  0x7e   : > { %p2547_p6 = pneg %p2546_p2  ;;  %p2553_p0 = por %p2552_p13, %p2551_p10 }
  0x80   : > { %p2554_p4 = pnand %p2553_p0, %p2547_p6 }
  0x82   : > { %2557 = shalt.err (!%p2554_p4)
}
  0x83   : > { %s2674_s23 = smov 512   ;;  %s3394_s24 = smov 16  }
  0x84   : > { %s3395_s15 = smov 256   ;;  %s3396_s27 = sadd.s32 1, %s2644_s17 }
  0x85   : > { %2355 = dma.hbm_to_vmem [thread:$0]  (!%p3393_p8), %s2897_s22, 3072, %s2888_s12, %s2900_s8, %s2674_s23, %s3395_s15, %s3394_s24  }
  0x86   : > { %s2935_s9 = scalar_select %p50_p1, %s2644_s17, %s3396_s27  }
  0x87   : > { %p3397_p9 = scmp.ne.s32.totalorder %s3388_s5, 0 }
  0x88   : > { %s2940_s14 = sand.u32 (!%p3397_p9), 1, %s2640_s16   ;;  %p3398_p8 = scmp.ne.s32.totalorder (!%p3397_p9), %s3384_s28, 0 }
  0x89   : > { %249 = sbr.rel (%p3397_p9) target bundleno = 1151 (0x47f), region = 36  ;;  %s252_s13 = scalar_lea.sflag (!%p3397_p9), [#allocation3], %s2940_s14 }
  0x8a   : > { %s2324_s11 = smul.u32 (!%p3397_p9), 192, %s2940_s14 }
  0x8c   : > { %s2946_s7 = scalar_lea.vmem (!%p3397_p9), [#allocation2], %s2324_s11 }
  0x90   : > { %2619 = dma.done.wait (%p3398_p8), %s252_s13, 3072  }
  0x91   : > { %2621 = vsyncadd (%p3398_p8), %s252_s13, 4294964224  ;;  %p3399_p1 = scmp.ne.s32.totalorder %s3382_s26, 0 }
  0x93   : > { %2623 = dma.done.wait (%p3399_p1), [#allocation6], 17408  }
  0x94   : > { %2625 = vsyncadd (%p3399_p1), [#allocation6], 4294949888 }
  0x95   : > { %2627 = dma.done.wait (%p3399_p1), [#allocation9], 6144  }
  0x96   : > { %2629 = vsyncadd (%p3399_p1), [#allocation9], 4294961152  ;;  %v2675_v0 = vmov 0.0   ;;  %v297_v1 = vld [vmem:[%s2946_s7 + $0x8] sm:$0xff]  ;;  %v299_v2 = vld [vmem:[%s2946_s7 + $0x18] sm:$0xff]  ;;  %vm660_vm0 = vcmask 261120  }
  0x97   : > { %737 = vmatprep.mubr.f32.mxu0 %v2675_v0  ;;  %826 = vmatprep.mubr.f32.mxu1 %v2675_v0  ;;  %v2055_v3 = vld [vmem:[%s2946_s7 + $0x48] sm:$0xff]  ;;  %v305_v4 = vmax.f32 %v297_v1, 0.0  ;;  %v307_v5 = vmax.f32 %v299_v2, 0.0  ;;  %v2057_v6 = vld [vmem:[%s2946_s7 + $0x58] sm:$0xff]  ;;  %v296_v13 = vld [vmem:[%s2946_s7] sm:$0xff]  ;;  %s3221_s26 = scalar_lea.vmem [#allocation10], %s2324_s11 }
  0x98   : > { %v338_v7 = vmax.f32 %v2055_v3, 0.0  ;;  %v2063_v8 = vld [vmem:[%s2946_s7 + $0x88] sm:$0xff]  ;;  %v2065_v9 = vld [vmem:[%s2946_s7 + $0x98] sm:$0xff]  ;;  %v340_v10 = vmax.f32 %v2057_v6, 0.0  ;;  %v298_v14 = vld [vmem:[%s2946_s7 + $0x10] sm:$0xff]  ;;  %v304_v18 = vmax.f32 %v296_v13, 0.0 }
  0x99   : > { %v371_v11 = vmax.f32 %v2063_v8, 0.0  ;;  %v373_v12 = vmax.f32 %v2065_v9, 0.0  ;;  %v313_v15 = vmin.f32 %v305_v4, 1.0  ;;  %v315_v16 = vmin.f32 %v307_v5, 1.0  ;;  %v2054_v27 = vld [vmem:[%s2946_s7 + $0x40] sm:$0xff]  ;;  %v2056_v28 = vld [vmem:[%s2946_s7 + $0x50] sm:$0xff] }
  0x9a   : > { %v346_v17 = vmin.f32 %v338_v7, 1.0  ;;  %v348_v19 = vmin.f32 %v340_v10, 1.0  ;;  %v306_v22 = vmax.f32 %v298_v14, 0.0  ;;  %v312_v26 = vmin.f32 %v304_v18, 1.0  ;;  %v2062_v33 = vld [vmem:[%s2946_s7 + $0x80] sm:$0xff]  ;;  %v2064_v34 = vld [vmem:[%s2946_s7 + $0x90] sm:$0xff] }
  0x9b   : > { %v379_v20 = vmin.f32 %v371_v11, 1.0  ;;  %v381_v21 = vmin.f32 %v373_v12, 1.0  ;;  %v2970_v23 = vmul.f32 255.0, %v313_v15  ;;  %v2972_v24 = vmul.f32 255.0, %v315_v16  ;;  %v301_v49 = vld [vmem:[%s2946_s7 + $0x28] sm:$0xff]  ;;  %v303_v50 = vld [vmem:[%s2946_s7 + $0x38] sm:$0xff] }
  0x9c   : > { %v2974_v25 = vmul.f32 255.0, %v346_v17  ;;  %v2978_v29 = vmul.f32 255.0, %v348_v19  ;;  %v314_v32 = vmin.f32 %v306_v22, 1.0  ;;  %v2992_v42 = vmul.f32 255.0, %v312_v26  ;;  %v2059_v59 = vld [vmem:[%s2946_s7 + $0x68] sm:$0xff]  ;;  %v2061_v5 = vld [vmem:[%s2946_s7 + $0x78] sm:$0xff] }
  0x9d   : > { %v2980_v30 = vmul.f32 255.0, %v379_v20  ;;  %v2982_v31 = vmul.f32 255.0, %v381_v21  ;;  %v395_v35 = vmul.f32 0.299, %v2970_v23  ;;  %v397_v36 = vmul.f32 0.299, %v2972_v24 }
  0x9e   : > { %v403_v37 = vmul.f32 0.587, %v2974_v25  ;;  %v405_v38 = vmul.f32 0.587, %v2978_v29  ;;  %v2994_v43 = vmul.f32 255.0, %v314_v32  ;;  %v337_v44 = vmax.f32 %v2054_v27, 0.0 }
  0x9f   : > { %v419_v39 = vmul.f32 0.114, %v2980_v30  ;;  %v421_v40 = vmul.f32 0.114, %v2982_v31  ;;  %v339_v46 = vmax.f32 %v2056_v28, 0.0  ;;  %v370_v47 = vmax.f32 %v2062_v33, 0.0 }
  0xa0   : > { %v411_v41 = vadd.f32 %v403_v37, %v395_v35  ;;  %v413_v45 = vadd.f32 %v405_v38, %v397_v36  ;;  %v372_v48 = vmax.f32 %v2064_v34, 0.0  ;;  %v345_v52 = vmin.f32 %v337_v44, 1.0  ;;  %v2067_v6 = vld [vmem:[%s2946_s7 + $0xa8] sm:$0xff]  ;;  %v2069_v11 = vld [vmem:[%s2946_s7 + $0xb8] sm:$0xff]  ;;  %v300_v27 = vld [vmem:[%s2946_s7 + $0x20] sm:$0xff]  ;;  %s2325_s28 = smul.u32 48, %s2652_s19 }
  0xa1   : > { %v394_v53 = vmul.f32 0.299, %v2992_v42  ;;  %v396_v54 = vmul.f32 0.299, %v2994_v43  ;;  %v347_v56 = vmin.f32 %v339_v46, 1.0  ;;  %v378_v57 = vmin.f32 %v370_v47, 1.0 }
  0xa2   : > { %v427_v51 = vadd.f32 %v419_v39, %v411_v41  ;;  %v429_v55 = vadd.f32 %v421_v40, %v413_v45  ;;  %v380_v58 = vmin.f32 %v372_v48, 1.0  ;;  %v3001_v61 = vmul.f32 255.0, %v345_v52  ;;  %v302_v28 = vld [vmem:[%s2946_s7 + $0x30] sm:$0xff]  ;;  %v2058_v40 = vld [vmem:[%s2946_s7 + $0x60] sm:$0xff]  ;;  %s2142_s5 = sshll.u32 %s2648_s18, 1  ;;  %s1915_s19 = sshll.u32 %s3221_s26, 4  ;;  %s3300_s19 = int_to_ptr.vmem [resolvable:$true] %s1915_s19 }
  0xa3   : > { %v309_v62 = vmax.f32 %v301_v49, 0.0  ;;  %v311_v63 = vmax.f32 %v303_v50, 0.0  ;;  %v3003_v2 = vmul.f32 255.0, %v347_v56  ;;  %v3005_v3 = vmul.f32 255.0, %v378_v57  ;;  %v2060_v47 = vld [vmem:[%s2946_s7 + $0x70] sm:$0xff]  ;;  %v2066_v52 = vld [vmem:[%s2946_s7 + $0xa0] sm:$0xff]  ;;  %s1912_s18 = sadd.s32 %s2325_s28, %s2142_s5 }
  0xa4   : > { %v2071_v60 = vadd.f32 -128.0, %v427_v51  ;;  %v2073_v1 = vadd.f32 -128.0, %v429_v55  ;;  %v3007_v4 = vmul.f32 255.0, %v380_v58  ;;  %v402_v7 = vmul.f32 0.587, %v3001_v61  ;;  %v2068_v57 = vld [vmem:[%s2946_s7 + $0xb0] sm:$0xff] }
  0xa5   : > { %v317_v8 = vmin.f32 %v309_v62, 1.0  ;;  %v319_v9 = vmin.f32 %v311_v63, 1.0  ;;  %v342_v10 = vmax.f32 %v2059_v59, 0.0  ;;  %v404_v13 = vmul.f32 0.587, %v3003_v2  ;;  %s2143_s22 = sshll.u32 %s1912_s18, 7 }
  0xa6   : > { %v2146_v12 = vpack.c.bf16 %v2073_v1, %v2071_v60  ;;  %v418_v14 = vmul.f32 0.114, %v3005_v3  ;;  %v420_v15 = vmul.f32 0.114, %v3007_v4  ;;  %v410_v16 = vadd.f32 %v402_v7, %v394_v53  ;;  %s3306_s8 = scalar_lea.hbm %s3366_s4, %s2143_s22  ;;  %s1897_s10 = scalar_lea.sflag [#allocation4], %s2940_s14 }
  0xa7   : > { %v3016_v17 = vmul.f32 255.0, %v317_v8  ;;  %v3018_v18 = vmul.f32 255.0, %v319_v9  ;;  %v344_v19 = vmax.f32 %v2061_v5, 0.0  ;;  %v412_v20 = vadd.f32 %v404_v13, %v396_v54  ;;  %s2558_s25 = scalar_lea.vmem %s3300_s19, 3072  ;;  %p3400_p5 = scmp.ne.s32.totalorder %s3385_s29, 0 }
  0xa8   : > { %2147 = vmatprep.subr.bf16.mxu0 %v2146_v12  ;;  %v350_v21 = vmin.f32 %v342_v10, 1.0  ;;  %v375_v22 = vmax.f32 %v2067_v6, 0.0  ;;  %v377_v26 = vmax.f32 %v2069_v11, 0.0  ;;  %v426_v32 = vadd.f32 %v418_v14, %v410_v16  ;;  %p2559_p11 = scmp.ne.s32.totalorder %s3300_s19, %s2558_s25  ;;  %s2676_s23 = smov [#allocation10]  }
  0xa9   : > { %v352_v33 = vmin.f32 %v344_v19, 1.0  ;;  %v399_v34 = vmul.f32 0.299, %v3016_v17  ;;  %v401_v35 = vmul.f32 0.299, %v3018_v18  ;;  %v428_v36 = vadd.f32 %v420_v15, %v412_v20  ;;  %s2562_s24 = sshll.u32 %s2676_s23, 4  ;;  %s2563_s24 = int_to_ptr.vmem [resolvable:$false] %s2562_s24 }
  0xaa   : > { %v3024_v37 = vmul.f32 255.0, %v350_v21  ;;  %v383_v38 = vmin.f32 %v375_v22, 1.0  ;;  %v385_v39 = vmin.f32 %v377_v26, 1.0  ;;  %v2070_v41 = vadd.f32 -128.0, %v426_v32  ;;  %p2560_p3 = pnand %p2559_p11, %p3400_p5  ;;  %s2564_s15 = scalar_lea.vmem %s2563_s24, 6144 }
  0xab   : > { %v3027_v44 = vmul.f32 255.0, %v352_v33  ;;  %v308_v45 = vmax.f32 %v300_v27, 0.0  ;;  %v310_v46 = vmax.f32 %v302_v28, 0.0  ;;  %v2072_v48 = vadd.f32 -128.0, %v428_v36  ;;  %p2565_p12 = scmp.lt.s32.totalorder %s3300_s19, %s2563_s24  ;;  %p2566_p2 = scmp.lt.s32.totalorder %s2564_s15, %s2558_s25 }
  0xac   : > { %v3030_v49 = vmul.f32 255.0, %v383_v38  ;;  %v3032_v50 = vmul.f32 255.0, %v385_v39  ;;  %v407_v51 = vmul.f32 0.587, %v3024_v37  ;;  %v341_v56 = vmax.f32 %v2058_v40, 0.0  ;;  %p2561_p7 = pneg %p2560_p3 }
  0xad   : > { %v409_v53 = vmul.f32 0.587, %v3027_v44  ;;  %v316_v54 = vmin.f32 %v308_v45, 1.0  ;;  %v318_v55 = vmin.f32 %v310_v46, 1.0  ;;  %v2148_v58 = vpack.c.bf16 %v2072_v48, %v2070_v41  ;;  %p2567_p6 = por %p2566_p2, %p2565_p12 }
  0xae   : > { %v415_v59 = vadd.f32 %v407_v51, %v399_v34  ;;  %v423_v60 = vmul.f32 0.114, %v3030_v49  ;;  %v425_v62 = vmul.f32 0.114, %v3032_v50  ;;  %v343_v6 = vmax.f32 %v2060_v47, 0.0 }
  0xaf   : > { %v417_v63 = vadd.f32 %v409_v53, %v401_v35  ;;  %v3040_v1 = vmul.f32 255.0, %v316_v54  ;;  %v3042_v5 = vmul.f32 255.0, %v318_v55  ;;  %2149 = vmatpush1.bf16.msra.mxu0 %v2148_v58  ;;  %v349_v8 = vmin.f32 %v341_v56, 1.0  ;;  %p2568_p10 = pnand %p2567_p6, %p2561_p7 }
  0xb0   : > { %v431_v7 = vadd.f32 %v423_v60, %v415_v59  ;;  %v374_v9 = vmax.f32 %v2066_v52, 0.0  ;;  %v376_v10 = vmax.f32 %v2068_v57, 0.0  ;;  %v351_v12 = vmin.f32 %v343_v6, 1.0 }
  0xb1   : > { %v433_v11 = vadd.f32 %v425_v62, %v417_v63  ;;  %v398_v13 = vmul.f32 0.299, %v3040_v1  ;;  %v400_v14 = vmul.f32 0.299, %v3042_v5  ;;  %v3046_v16 = vmul.f32 255.0, %v349_v8 }
  0xb2   : > { %v2075_v15 = vadd.f32 -128.0, %v431_v7  ;;  %v382_v19 = vmin.f32 %v374_v9, 1.0  ;;  %v384_v20 = vmin.f32 %v376_v10, 1.0  ;;  %v3048_v22 = vmul.f32 255.0, %v351_v12 }
  0xb3   : > { %v2077_v21 = vadd.f32 -128.0, %v433_v11  ;;  %v443_v26 = vmul.f32 -0.168736, %v2970_v23  ;;  %v445_v27 = vmul.f32 -0.168736, %v2972_v24  ;;  %v467_v39 = vmul.f32 0.5, %v2980_v30 }
  0xb4   : > { %v3052_v28 = vmul.f32 255.0, %v382_v19  ;;  %v3054_v32 = vmul.f32 255.0, %v384_v20  ;;  %v406_v33 = vmul.f32 0.587, %v3046_v16  ;;  %v451_v34 = vmul.f32 0.331264, %v2974_v25 }
  0xb5   : > { %v2150_v35 = vpack.c.bf16 %v2077_v21, %v2075_v15  ;;  %v408_v36 = vmul.f32 0.587, %v3048_v22  ;;  %v453_v38 = vmul.f32 0.331264, %v2978_v29  ;;  %v469_v51 = vmul.f32 0.5, %v2982_v31 }
  0xb6   : > { %v414_v40 = vadd.f32 %v406_v33, %v398_v13  ;;  %v422_v41 = vmul.f32 0.114, %v3052_v28  ;;  %v424_v45 = vmul.f32 0.114, %v3054_v32  ;;  %v459_v46 = vsub.f32 %v443_v26, %v451_v34 }
  0xb7   : > { %2151 = vmatprep.subr.bf16.mxu0 %v2150_v35  ;;  %v416_v47 = vadd.f32 %v408_v36, %v400_v14  ;;  %v461_v48 = vsub.f32 %v445_v27, %v453_v38  ;;  %v442_v52 = vmul.f32 -0.168736, %v2992_v42  ;;  %v444_v55 = vmul.f32 -0.168736, %v2994_v43  ;;  %v3079_v36 = vld [vmem:[#allocation5] sm:$0xff] }
  0xb8   : > { %v430_v53 = vadd.f32 %v422_v41, %v414_v40  ;;  %v475_v54 = vadd.f32 %v467_v39, %v459_v46  ;;  %v450_v56 = vmul.f32 0.331264, %v3001_v61  ;;  %v452_v59 = vmul.f32 0.331264, %v3003_v2 }
  0xb9   : > { %v432_v57 = vadd.f32 %v424_v45, %v416_v47  ;;  %v477_v58 = vadd.f32 %v469_v51, %v461_v48  ;;  %v466_v60 = vmul.f32 0.5, %v3005_v3  ;;  %v468_v6 = vmul.f32 0.5, %v3007_v4 }
  0xba   : > { %v2074_v62 = vadd.f32 -128.0, %v430_v53  ;;  %v458_v63 = vsub.f32 %v442_v52, %v450_v56  ;;  %v447_v7 = vmul.f32 -0.168736, %v3016_v17  ;;  %v460_v10 = vsub.f32 %v444_v55, %v452_v59 }
  0xbb   : > { %v2076_v8 = vadd.f32 -128.0, %v432_v57  ;;  %v2154_v9 = vpack.c.bf16 %v477_v58, %v475_v54  ;;  %v449_v11 = vmul.f32 -0.168736, %v3018_v18  ;;  %v455_v13 = vmul.f32 0.331264, %v3024_v37 }
  0xbc   : > { %v474_v12 = vadd.f32 %v466_v60, %v458_v63  ;;  %v457_v14 = vmul.f32 0.331264, %v3027_v44  ;;  %v471_v15 = vmul.f32 0.5, %v3030_v49  ;;  %v476_v20 = vadd.f32 %v468_v6, %v460_v10 }
  0xbd   : > { %v2152_v19 = vpack.c.bf16 %v2076_v8, %v2074_v62  ;;  %2155 = vmatprep.subr.bf16.mxu1 %v2154_v9  ;;  %v473_v21 = vmul.f32 0.5, %v3032_v50  ;;  %v446_v26 = vmul.f32 -0.168736, %v3040_v1  ;;  %v463_v27 = vsub.f32 %v447_v7, %v455_v13  ;;  %v3103_v9 = vld [vmem:[#allocation5 + $0x10] sm:$0xff] }
  0xbe   : > { %v465_v33 = vsub.f32 %v449_v11, %v457_v14  ;;  %v448_v34 = vmul.f32 -0.168736, %v3042_v5  ;;  %v454_v35 = vmul.f32 0.331264, %v3046_v16  ;;  %v2156_v38 = vpack.c.bf16 %v476_v20, %v474_v12 }
  0xbf   : > { %2153 = vmatpush1.bf16.msra.mxu0 %v2152_v19  ;;  %v456_v39 = vmul.f32 0.331264, %v3048_v22  ;;  %v470_v40 = vmul.f32 0.5, %v3052_v28  ;;  %v472_v41 = vmul.f32 0.5, %v3054_v32  ;;  %v479_v45 = vadd.f32 %v471_v15, %v463_v27  ;;  %v597_v19 = vld [vmem:[#allocation7 + $0x208] sm:$0xff]  ;;  %v598_v27 = vld [vmem:[#allocation7 + $0x210] sm:$0xff] }
  0xc0   : > { %v481_v46 = vadd.f32 %v473_v21, %v465_v33  ;;  %v462_v47 = vsub.f32 %v446_v26, %v454_v35  ;;  %v483_v48 = vmul.f32 0.5, %v2970_v23  ;;  %2157 = vmatpush1.bf16.msra.mxu1 %v2156_v38  ;;  %v485_v52 = vmul.f32 0.5, %v2972_v24  ;;  %v3093_v23 = vld [vmem:[#allocation5 + $0x8] sm:$0xff]  ;;  %v599_v26 = vld [vmem:[#allocation7 + $0x218] sm:$0xff] }
  0xc1   : > { %v464_v51 = vsub.f32 %v448_v34, %v456_v39  ;;  %v491_v53 = vmul.f32 0.418688, %v2974_v25  ;;  %v493_v54 = vmul.f32 0.418688, %v2978_v29  ;;  %v507_v57 = vmul.f32 0.081312, %v2980_v30 }
  0xc2   : > { %2078 = vmatmul.mubr.msk.f32.vlgmr.msra.gmra.mrb[0].mxu0 %vm660_vm0, %v3079_v36  ;;  %v2158_v55 = vpack.c.bf16 %v481_v46, %v479_v45  ;;  %v478_v56 = vadd.f32 %v470_v40, %v462_v47  ;;  %v509_v58 = vmul.f32 0.081312, %v2982_v31  ;;  %v482_v25 = vmul.f32 0.5, %v2992_v42  ;;  %v601_v39 = vld [vmem:[#allocation7 + $0x228] sm:$0xff]  ;;  %v603_v40 = vld [vmem:[#allocation7 + $0x238] sm:$0xff]  ;;  %v602_v46 = vld [vmem:[#allocation7 + $0x230] sm:$0xff] }
  0xc3   : > { %743 = vmatprep.mubr.f32.mxu0 %v2675_v0  ;;  %v480_v59 = vadd.f32 %v472_v41, %v464_v51  ;;  %v499_v60 = vsub.f32 %v483_v48, %v491_v53  ;;  %v501_v24 = vsub.f32 %v485_v52, %v493_v54  ;;  %v484_v29 = vmul.f32 0.5, %v2994_v43  ;;  %v605_v51 = vld [vmem:[#allocation7 + $0x248] sm:$0xff]  ;;  %v607_v52 = vld [vmem:[#allocation7 + $0x258] sm:$0xff]  ;;  %v604_v54 = vld [vmem:[#allocation7 + $0x240] sm:$0xff] }
  0xc4   : > { %2159 = vmatprep.subr.bf16.mxu1 %v2158_v55  ;;  %v490_v62 = vmul.f32 0.418688, %v3001_v61  ;;  %v492_v63 = vmul.f32 0.418688, %v3003_v2  ;;  %v487_v30 = vmul.f32 0.5, %v3016_v17  ;;  %v489_v61 = vmul.f32 0.5, %v3018_v18 }
  0xc5   : > { %v2160_v6 = vpack.c.bf16 %v480_v59, %v478_v56  ;;  %v515_v31 = vsub.f32 %v499_v60, %v507_v57  ;;  %v517_v7 = vsub.f32 %v501_v24, %v509_v58  ;;  %v506_v8 = vmul.f32 0.081312, %v3005_v3  ;;  %v606_v55 = vld [vmem:[#allocation7 + $0x250] sm:$0xff]  ;;  %v609_v57 = vld [vmem:[#allocation7 + $0x268] sm:$0xff]  ;;  %v611_v58 = vld [vmem:[#allocation7 + $0x278] sm:$0xff] }
  0xc6   : > { %2079 = vmatmul.mubr.msk.f32.gmra.mrb[2].mxu0 %vm660_vm0, %v3093_v23  ;;  %v498_v42 = vsub.f32 %v482_v25, %v490_v62  ;;  %v500_v10 = vsub.f32 %v484_v29, %v492_v63  ;;  %v508_v43 = vmul.f32 0.081312, %v3007_v4  ;;  %v495_v17 = vmul.f32 0.418688, %v3024_v37  ;;  %v596_v37 = vld [vmem:[#allocation7 + $0x200] sm:$0xff]  ;;  %v610_v25 = vld [vmem:[#allocation7 + $0x270] sm:$0xff] }
  0xc7   : > { %749 = vmatprep.mubr.f32.mxu0 %v2675_v0  ;;  %2161 = vmatpush1.bf16.msra.mxu1 %v2160_v6  ;;  %v2162_v2 = vpack.c.bf16 %v517_v7, %v515_v31  ;;  %v497_v11 = vmul.f32 0.418688, %v3027_v44  ;;  %v511_v3 = vmul.f32 0.081312, %v3030_v49  ;;  %v513_v14 = vmul.f32 0.081312, %v3032_v50 }
  0xc8   : > { %v514_v12 = vsub.f32 %v498_v42, %v506_v8  ;;  %v516_v13 = vsub.f32 %v500_v10, %v508_v43  ;;  %v486_v15 = vmul.f32 0.5, %v3040_v1  ;;  %v503_v4 = vsub.f32 %v487_v30, %v495_v17  ;;  %v608_v24 = vld [vmem:[#allocation7 + $0x260] sm:$0xff]  ;;  %v613_v29 = vld [vmem:[#allocation7 + $0x288] sm:$0xff]  ;;  %v615_v62 = vld [vmem:[#allocation7 + $0x298] sm:$0xff] }
  0xc9   : > { %2163 = vmatprep.subr.bf16.mxu0 %v2162_v2  ;;  %v505_v18 = vsub.f32 %v489_v61, %v497_v11  ;;  %v488_v20 = vmul.f32 0.5, %v3042_v5  ;;  %v494_v21 = vmul.f32 0.418688, %v3046_v16  ;;  %v496_v49 = vmul.f32 0.418688, %v3048_v22  ;;  %v3123_v5 = vld [vmem:[#allocation5 + $0x18] sm:$0xff] }
  0xca   : > { %2080 = vmatmul.mubr.msk.f32.gmra.mrb[4].mxu0 %vm660_vm0, %v3103_v9  ;;  %2082 = vmatmul.mubr.msk.f32.vlgmr.msra.gmra.mrb[0].mxu1 %vm660_vm0, %v3079_v36  ;;  %v2164_v44 = vpack.c.bf16 %v516_v13, %v514_v12  ;;  %v510_v50 = vmul.f32 0.081312, %v3052_v28  ;;  %v512_v1 = vmul.f32 0.081312, %v3054_v32  ;;  %v519_v16 = vsub.f32 %v503_v4, %v511_v3  ;;  %v600_v32 = vld [vmem:[#allocation7 + $0x220] sm:$0xff]  ;;  %v614_v6 = vld [vmem:[#allocation7 + $0x290] sm:$0xff] }
  0xcb   : > { %755 = vmatprep.mubr.f32.mxu0 %v2675_v0  ;;  %832 = vmatprep.mubr.f32.mxu1 %v2675_v0  ;;  %v521_v33 = vsub.f32 %v505_v18, %v513_v14  ;;  %v502_v34 = vsub.f32 %v486_v15, %v494_v21  ;;  %v504_v35 = vsub.f32 %v488_v20, %v496_v49  ;;  %v612_v30 = vld [vmem:[#allocation7 + $0x280] sm:$0xff]  ;;  %v617_v31 = vld [vmem:[#allocation7 + $0x2a8] sm:$0xff]  ;;  %v619_v7 = vld [vmem:[#allocation7 + $0x2b8] sm:$0xff] }
  0xcc   : > { %2165 = vmatpush1.bf16.msra.mxu0 %v2164_v44  ;;  %v2170_v38 = vpack.c.bf16 %v599_v26, %v597_v19  ;;  %v2172_v45 = vpack.c.bf16 %v598_v27, %v596_v37  ;;  %v2174_v47 = vpack.c.bf16 %v603_v40, %v601_v39  ;;  %v2176_v53 = vpack.c.bf16 %v602_v46, %v600_v32  ;;  %v618_v10 = vld [vmem:[#allocation7 + $0x2b0] sm:$0xff]  ;;  %v621_v43 = vld [vmem:[#allocation7 + $0x2c8] sm:$0xff]  ;;  %v623_v61 = vld [vmem:[#allocation7 + $0x2d8] sm:$0xff] }
  0xcd   : > { %v2166_v41 = vpack.c.bf16 %v521_v33, %v519_v16  ;;  %v518_v22 = vsub.f32 %v502_v34, %v510_v50  ;;  %v520_v28 = vsub.f32 %v504_v35, %v512_v1  ;;  %v2178_v56 = vpack.c.bf16 %v607_v52, %v605_v51  ;;  %v620_v11 = vld [vmem:[#allocation7 + $0x2c0] sm:$0xff]  ;;  %v622_v3 = vld [vmem:[#allocation7 + $0x2d0] sm:$0xff]  ;;  %v627_v12 = vld [vmem:[#allocation7 + $0x2f8] sm:$0xff] }
  0xce   : > { %2081 = vmatmul.mubr.msk.f32.gmra.mrb[6].mxu0 %vm660_vm0, %v3123_v5  ;;  %2083 = vmatmul.mubr.msk.f32.gmra.mrb[2].mxu1 %vm660_vm0, %v3093_v23  ;;  %v2180_v59 = vpack.c.bf16 %v606_v55, %v604_v54  ;;  %v2182_v60 = vpack.c.bf16 %v611_v58, %v609_v57  ;;  %v2184_v63 = vpack.c.bf16 %v610_v25, %v608_v24  ;;  %v624_v15 = vld [vmem:[#allocation7 + $0x2e0] sm:$0xff]  ;;  %v626_v19 = vld [vmem:[#allocation7 + $0x2f0] sm:$0xff]  ;;  %v629_v4 = vld [vmem:[#allocation7 + $0x308] sm:$0xff] }
  0xcf   : > { %838 = vmatprep.mubr.f32.mxu1 %v2675_v0  ;;  %2167 = vmatprep.subr.bf16.mxu0 %v2166_v41  ;;  %v2168_v48 = vpack.c.bf16 %v520_v28, %v518_v22  ;;  %v2188_v8 = vpack.c.bf16 %v614_v6, %v612_v30  ;;  %v2190_v42 = vpack.c.bf16 %v619_v7, %v617_v31  ;;  %v631_v18 = vld [vmem:[#allocation7 + $0x318] sm:$0xff]  ;;  %v628_v26 = vld [vmem:[#allocation7 + $0x300] sm:$0xff]  ;;  %v630_v37 = vld [vmem:[#allocation7 + $0x310] sm:$0xff] }
  0xd0   : > { %915 = vmatprep.mubr.f32.mxu0 %v2675_v0  ;;  %2171 = vmatprep.subr.bf16.mxu1 %v2170_v38  ;;  %v2194_v17 = vpack.c.bf16 %v623_v61, %v621_v43  ;;  %v2196_v13 = vpack.c.bf16 %v622_v3, %v620_v11  ;;  %v2200_v20 = vpack.c.bf16 %v626_v19, %v624_v15  ;;  %v633_v27 = vld [vmem:[#allocation7 + $0x328] sm:$0xff]  ;;  %v635_v44 = vld [vmem:[#allocation7 + $0x338] sm:$0xff]  ;;  %v632_v1 = vld [vmem:[#allocation7 + $0x320] sm:$0xff] }
  0xd1   : > { %2173 = vmatpush1.bf16.msra.mxu1 %v2172_v45  ;;  %2169 = vmatpush1.bf16.msra.mxu0 %v2168_v48  ;;  %v2202_v21 = vpack.c.bf16 %v631_v18, %v629_v4  ;;  %v2204_v49 = vpack.c.bf16 %v630_v37, %v628_v26  ;;  %v2206_v50 = vpack.c.bf16 %v635_v44, %v633_v27  ;;  %v637_v16 = vld [vmem:[#allocation7 + $0x348] sm:$0xff]  ;;  %v639_v33 = vld [vmem:[#allocation7 + $0x358] sm:$0xff]  ;;  %v636_v38 = vld [vmem:[#allocation7 + $0x340] sm:$0xff] }
  0xd2   : > { %2084 = vmatmul.mubr.msk.f32.gmra.mrb[4].mxu1 %vm660_vm0, %v3103_v9  ;;  %2175 = vmatprep.subr.bf16.mxu1 %v2174_v47  ;;  %v2210_v35 = vpack.c.bf16 %v639_v33, %v637_v16  ;;  %v638_v39 = vld [vmem:[#allocation7 + $0x350] sm:$0xff]  ;;  %v641_v40 = vld [vmem:[#allocation7 + $0x368] sm:$0xff]  ;;  %v643_v41 = vld [vmem:[#allocation7 + $0x378] sm:$0xff] }
  0xd3   : > { %844 = vmatprep.mubr.f32.mxu1 %v2675_v0  ;;  %v2212_v22 = vpack.c.bf16 %v638_v39, %v636_v38  ;;  %v2214_v45 = vpack.c.bf16 %v643_v41, %v641_v40  ;;  %v640_v28 = vld [vmem:[#allocation7 + $0x360] sm:$0xff]  ;;  %v642_v32 = vld [vmem:[#allocation7 + $0x370] sm:$0xff]  ;;  %v645_v46 = vld [vmem:[#allocation7 + $0x388] sm:$0xff] }
  0xd4   : > { %2086 = vmatmul.mubr.msk.f32.vlgmr.msra.gmra.mrb[8].mxu0 %vm660_vm0, %v3079_v36  ;;  %v2186_v36 = vpack.c.bf16 %v615_v62, %v613_v29  ;;  %v647_v47 = vld [vmem:[#allocation7 + $0x398] sm:$0xff]  ;;  %v2216_v48 = vpack.c.bf16 %v642_v32, %v640_v28  ;;  %v644_v52 = vld [vmem:[#allocation7 + $0x380] sm:$0xff]  ;;  %v649_v54 = vld [vmem:[#allocation7 + $0x3a8] sm:$0xff] }
  0xd5   : > { %2177 = vmatpush1.bf16.msra.mxu1 %v2176_v53  ;;  %921 = vmatprep.mubr.f32.mxu0 %v2675_v0  ;;  %v2218_v51 = vpack.c.bf16 %v647_v47, %v645_v46  ;;  %v646_v53 = vld [vmem:[#allocation7 + $0x390] sm:$0xff]  ;;  %v651_v55 = vld [vmem:[#allocation7 + $0x3b8] sm:$0xff]  ;;  %v648_v58 = vld [vmem:[#allocation7 + $0x3a0] sm:$0xff] }
  0xd6   : > { %2085 = vmatmul.mubr.msk.f32.gmra.mrb[6].mxu1 %vm660_vm0, %v3123_v5  ;;  %2179 = vmatprep.subr.bf16.mxu1 %v2178_v56  ;;  %v2220_v56 = vpack.c.bf16 %v646_v53, %v644_v52  ;;  %v2222_v57 = vpack.c.bf16 %v651_v55, %v649_v54  ;;  %v655_v24 = vld [vmem:[#allocation7 + $0x3d8] sm:$0xff]  ;;  %v652_v62 = vld [vmem:[#allocation7 + $0x3c0] sm:$0xff] }
  0xd7   : > { %v659_v30 = vld [vmem:[#allocation7 + $0x3f8] sm:$0xff]  ;;  %v656_v7 = vld [vmem:[#allocation7 + $0x3e0] sm:$0xff] }
  0xd8   : > { %2087 = vmatmul.mubr.msk.f32.gmra.mrb[10].mxu0 %vm660_vm0, %v3093_v23  ;;  %v616_v23 = vld [vmem:[#allocation7 + $0x2a0] sm:$0xff]  ;;  %v538_v11 = vld [vmem:[#allocation7 + $0x38] sm:$0xff] }
  0xd9   : > { %2181 = vmatpush1.bf16.msra.mxu1 %v2180_v59  ;;  %927 = vmatprep.mubr.f32.mxu0 %v2675_v0  ;;  %v2192_v2 = vpack.c.bf16 %v618_v10, %v616_v23  ;;  %v650_v59 = vld [vmem:[#allocation7 + $0x3b0] sm:$0xff]  ;;  %v532_v23 = vld [vmem:[#allocation7 + $0x8] sm:$0xff]  ;;  %v534_v10 = vld [vmem:[#allocation7 + $0x18] sm:$0xff] }
  0xda   : > { %2183 = vmatprep.subr.bf16.mxu1 %v2182_v60  ;;  %v653_v60 = vld [vmem:[#allocation7 + $0x3c8] sm:$0xff]  ;;  %v2224_v25 = vpack.c.bf16 %v650_v59, %v648_v58  ;;  %v531_v43 = vld [vmem:[#allocation7] sm:$0xff]  ;;  %v2234_v61 = vpack.c.bf16 %v534_v10, %v532_v23  ;;  %v542_v15 = vld [vmem:[#allocation7 + $0x58] sm:$0xff] }
  0xdb   : > { %v2226_v29 = vpack.c.bf16 %v655_v24, %v653_v60  ;;  %v539_v18 = vld [vmem:[#allocation7 + $0x40] sm:$0xff]  ;;  %v546_v26 = vld [vmem:[#allocation7 + $0x78] sm:$0xff]  ;;  %v573_v10 = vld [vmem:[#allocation7 + $0x150] sm:$0xff] }
  0xdc   : > { %2088 = vmatmul.mubr.msk.f32.gmra.mrb[12].mxu0 %vm660_vm0, %v3103_v9  ;;  %v625_v9 = vld [vmem:[#allocation7 + $0x2e8] sm:$0xff]  ;;  %2235 = vmatprep.subr.bf16.mxu0 %v2234_v61  ;;  %v543_v44 = vld [vmem:[#allocation7 + $0x60] sm:$0xff]  ;;  %v554_v38 = vld [vmem:[#allocation7 + $0xb8] sm:$0xff] }
  0xdd   : > { %2185 = vmatpush1.bf16.msra.mxu1 %v2184_v63  ;;  %933 = vmatprep.mubr.f32.mxu0 %v2675_v0  ;;  %v2198_v14 = vpack.c.bf16 %v627_v12, %v625_v9  ;;  %v654_v63 = vld [vmem:[#allocation7 + $0x3d0] sm:$0xff]  ;;  %v535_v12 = vld [vmem:[#allocation7 + $0x20] sm:$0xff]  ;;  %v558_v28 = vld [vmem:[#allocation7 + $0xd8] sm:$0xff] }
  0xde   : > { %2187 = vmatprep.subr.bf16.mxu1 %v2186_v36  ;;  %v657_v36 = vld [vmem:[#allocation7 + $0x3e8] sm:$0xff]  ;;  %v2228_v6 = vpack.c.bf16 %v654_v63, %v652_v62  ;;  %v547_v33 = vld [vmem:[#allocation7 + $0x80] sm:$0xff]  ;;  %v562_v52 = vld [vmem:[#allocation7 + $0xf8] sm:$0xff] }
  0xdf   : > { %v2230_v31 = vpack.c.bf16 %v659_v30, %v657_v36  ;;  %v551_v41 = vld [vmem:[#allocation7 + $0xa0] sm:$0xff]  ;;  %v566_v58 = vld [vmem:[#allocation7 + $0x118] sm:$0xff] }
  0xe0   : > { %2089 = vmatmul.mubr.msk.f32.gmra.mrb[14].mxu0 %vm660_vm0, %v3123_v5  ;;  %v634_v5 = vld [vmem:[#allocation7 + $0x330] sm:$0xff]  ;;  %v555_v47 = vld [vmem:[#allocation7 + $0xc0] sm:$0xff]  ;;  %v570_v62 = vld [vmem:[#allocation7 + $0x138] sm:$0xff] }
  0xe1   : > { %2189 = vmatpush1.bf16.msra.mxu1 %v2188_v8  ;;  %v2208_v34 = vpack.c.bf16 %v634_v5, %v632_v1  ;;  %v658_v8 = vld [vmem:[#allocation7 + $0x3f0] sm:$0xff]  ;;  %v550_v1 = vld [vmem:[#allocation7 + $0x98] sm:$0xff]  ;;  %v559_v55 = vld [vmem:[#allocation7 + $0xe0] sm:$0xff] }
  0xe2   : > { %2191 = vmatprep.subr.bf16.mxu1 %v2190_v42  ;;  %v2232_v42 = vpack.c.bf16 %v658_v8, %v656_v7  ;;  %v563_v24 = vld [vmem:[#allocation7 + $0x100] sm:$0xff]  ;;  %v574_v7 = vld [vmem:[#allocation7 + $0x158] sm:$0xff] }
  0xe3   : > { %v567_v30 = vld [vmem:[#allocation7 + $0x120] sm:$0xff]  ;;  %v578_v61 = vld [vmem:[#allocation7 + $0x178] sm:$0xff] }
  0xe4   : > { %v571_v23 = vld [vmem:[#allocation7 + $0x140] sm:$0xff] }
  0xe5   : > { %2193 = vmatpush1.bf16.msra.mxu1 %v2192_v2  ;;  %v533_v2 = vld [vmem:[#allocation7 + $0x10] sm:$0xff] }
  0xe6   : > { %2195 = vmatprep.subr.bf16.mxu1 %v2194_v17  ;;  %v536_v17 = vld [vmem:[#allocation7 + $0x28] sm:$0xff]  ;;  %v2236_v3 = vpack.c.bf16 %v533_v2, %v531_v43  ;;  %v2276_v2 = vpack.c.bf16 %v573_v10, %v571_v23  ;;  %v1104_v23 = vld [vmem:[#allocation8 + $0xd0] sm:$0xff] }
  0xe7   : > { %v2238_v9 = vpack.c.bf16 %v538_v11, %v536_v17  ;;  %v576_v43 = vld [vmem:[#allocation7 + $0x168] sm:$0xff]  ;;  %v575_v11 = vld [vmem:[#allocation7 + $0x160] sm:$0xff] }
  0xe8   : > { %2237 = vmatpush1.bf16.msra.mxu0 %v2236_v3  ;;  %v2278_v17 = vpack.c.bf16 %v578_v61, %v576_v43  ;;  %v577_v3 = vld [vmem:[#allocation7 + $0x170] sm:$0xff]  ;;  %v1105_v61 = vld [vmem:[#allocation8 + $0xd8] sm:$0xff] }
  0xe9   : > { %2197 = vmatpush1.bf16.msra.mxu1 %v2196_v13  ;;  %v537_v13 = vld [vmem:[#allocation7 + $0x30] sm:$0xff]  ;;  %2239 = vmatprep.subr.bf16.mxu0 %v2238_v9  ;;  %v580_v9 = vld [vmem:[#allocation7 + $0x188] sm:$0xff] }
  0xea   : > { %2199 = vmatprep.subr.bf16.mxu1 %v2198_v14  ;;  %v540_v14 = vld [vmem:[#allocation7 + $0x48] sm:$0xff]  ;;  %v2240_v19 = vpack.c.bf16 %v537_v13, %v535_v12  ;;  %v582_v12 = vld [vmem:[#allocation7 + $0x198] sm:$0xff]  ;;  %v2280_v13 = vpack.c.bf16 %v577_v3, %v575_v11 }
  0xeb   : > { %v2242_v4 = vpack.c.bf16 %v542_v15, %v540_v14  ;;  %v2282_v14 = vpack.c.bf16 %v582_v12, %v580_v9  ;;  %v579_v15 = vld [vmem:[#allocation7 + $0x180] sm:$0xff] }
  0xec   : > { %2241 = vmatpush1.bf16.msra.mxu0 %v2240_v19  ;;  %v581_v19 = vld [vmem:[#allocation7 + $0x190] sm:$0xff] }
  0xed   : > { %2201 = vmatpush1.bf16.msra.mxu1 %v2200_v20  ;;  %v541_v20 = vld [vmem:[#allocation7 + $0x50] sm:$0xff]  ;;  %2243 = vmatprep.subr.bf16.mxu0 %v2242_v4  ;;  %v2284_v4 = vpack.c.bf16 %v581_v19, %v579_v15 }
  0xee   : > { %2203 = vmatprep.subr.bf16.mxu1 %v2202_v21  ;;  %v544_v21 = vld [vmem:[#allocation7 + $0x68] sm:$0xff]  ;;  %v2244_v37 = vpack.c.bf16 %v541_v20, %v539_v18 }
  0xef   : > { %v2246_v27 = vpack.c.bf16 %v546_v26, %v544_v21 }
  0xf0   : > { %2245 = vmatpush1.bf16.msra.mxu0 %v2244_v37 }
  0xf1   : > { %2205 = vmatpush1.bf16.msra.mxu1 %v2204_v49  ;;  %v545_v49 = vld [vmem:[#allocation7 + $0x70] sm:$0xff]  ;;  %2247 = vmatprep.subr.bf16.mxu0 %v2246_v27 }
  0xf2   : > { %2207 = vmatprep.subr.bf16.mxu1 %v2206_v50  ;;  %v548_v50 = vld [vmem:[#allocation7 + $0x88] sm:$0xff]  ;;  %v2248_v5 = vpack.c.bf16 %v545_v49, %v543_v44 }
  0xf3   : > { %v2250_v16 = vpack.c.bf16 %v550_v1, %v548_v50 }
  0xf4   : > { %2249 = vmatpush1.bf16.msra.mxu0 %v2248_v5 }
  0xf5   : > { %2209 = vmatpush1.bf16.msra.mxu1 %v2208_v34  ;;  %v549_v34 = vld [vmem:[#allocation7 + $0x90] sm:$0xff]  ;;  %2251 = vmatprep.subr.bf16.mxu0 %v2250_v16 }
  0xf6   : > { %2211 = vmatprep.subr.bf16.mxu1 %v2210_v35  ;;  %v552_v35 = vld [vmem:[#allocation7 + $0xa8] sm:$0xff]  ;;  %v2252_v39 = vpack.c.bf16 %v549_v34, %v547_v33 }
  0xf7   : > { %v2254_v40 = vpack.c.bf16 %v554_v38, %v552_v35 }
  0xf8   : > { %2253 = vmatpush1.bf16.msra.mxu0 %v2252_v39 }
  0xf9   : > { %2213 = vmatpush1.bf16.msra.mxu1 %v2212_v22  ;;  %v553_v22 = vld [vmem:[#allocation7 + $0xb0] sm:$0xff]  ;;  %2255 = vmatprep.subr.bf16.mxu0 %v2254_v40 }
  0xfa   : > { %2215 = vmatprep.subr.bf16.mxu1 %v2214_v45  ;;  %v556_v45 = vld [vmem:[#allocation7 + $0xc8] sm:$0xff]  ;;  %v2256_v32 = vpack.c.bf16 %v553_v22, %v551_v41 }
  0xfb   : > { %v2258_v46 = vpack.c.bf16 %v558_v28, %v556_v45 }
  0xfc   : > { %2257 = vmatpush1.bf16.msra.mxu0 %v2256_v32 }
  0xfd   : > { %2217 = vmatpush1.bf16.msra.mxu1 %v2216_v48  ;;  %v557_v48 = vld [vmem:[#allocation7 + $0xd0] sm:$0xff]  ;;  %2259 = vmatprep.subr.bf16.mxu0 %v2258_v46 }
  0xfe   : > { %2219 = vmatprep.subr.bf16.mxu1 %v2218_v51  ;;  %v560_v51 = vld [vmem:[#allocation7 + $0xe8] sm:$0xff]  ;;  %v2260_v53 = vpack.c.bf16 %v557_v48, %v555_v47  ;;  %v586_v48 = vld [vmem:[#allocation7 + $0x1b8] sm:$0xff] }
  0xff   : > { %v2262_v54 = vpack.c.bf16 %v562_v52, %v560_v51  ;;  %v584_v47 = vld [vmem:[#allocation7 + $0x1a8] sm:$0xff]  ;;  %v583_v52 = vld [vmem:[#allocation7 + $0x1a0] sm:$0xff] }
 0x100   : > { %2261 = vmatpush1.bf16.msra.mxu0 %v2260_v53  ;;  %v2286_v51 = vpack.c.bf16 %v586_v48, %v584_v47  ;;  %v585_v53 = vld [vmem:[#allocation7 + $0x1b0] sm:$0xff] }
 0x101   : > { %2221 = vmatpush1.bf16.msra.mxu1 %v2220_v56  ;;  %v561_v56 = vld [vmem:[#allocation7 + $0xf0] sm:$0xff]  ;;  %2263 = vmatprep.subr.bf16.mxu0 %v2262_v54  ;;  %v2288_v54 = vpack.c.bf16 %v585_v53, %v583_v52 }
 0x102   : > { %2223 = vmatprep.subr.bf16.mxu1 %v2222_v57  ;;  %v564_v57 = vld [vmem:[#allocation7 + $0x108] sm:$0xff]  ;;  %v2264_v59 = vpack.c.bf16 %v561_v56, %v559_v55  ;;  %v590_v56 = vld [vmem:[#allocation7 + $0x1d8] sm:$0xff]  ;;  %v1079_v53 = vld [vmem:[#allocation8 + $0x10] sm:$0xff] }
 0x103   : > { %v2266_v60 = vpack.c.bf16 %v566_v58, %v564_v57  ;;  %v588_v55 = vld [vmem:[#allocation7 + $0x1c8] sm:$0xff]  ;;  %v587_v58 = vld [vmem:[#allocation7 + $0x1c0] sm:$0xff] }
 0x104   : > { %2265 = vmatpush1.bf16.msra.mxu0 %v2264_v59  ;;  %v2290_v57 = vpack.c.bf16 %v590_v56, %v588_v55  ;;  %v589_v59 = vld [vmem:[#allocation7 + $0x1d0] sm:$0xff] }
 0x105   : > { %2225 = vmatpush1.bf16.msra.mxu1 %v2224_v25  ;;  %v565_v25 = vld [vmem:[#allocation7 + $0x110] sm:$0xff]  ;;  %2267 = vmatprep.subr.bf16.mxu0 %v2266_v60  ;;  %v2292_v60 = vpack.c.bf16 %v589_v59, %v587_v58 }
 0x106   : > { %2227 = vmatprep.subr.bf16.mxu1 %v2226_v29  ;;  %v568_v29 = vld [vmem:[#allocation7 + $0x128] sm:$0xff]  ;;  %v2268_v63 = vpack.c.bf16 %v565_v25, %v563_v24  ;;  %v594_v25 = vld [vmem:[#allocation7 + $0x1f8] sm:$0xff] }
 0x107   : > { %v2270_v36 = vpack.c.bf16 %v570_v62, %v568_v29  ;;  %v592_v24 = vld [vmem:[#allocation7 + $0x1e8] sm:$0xff]  ;;  %v591_v62 = vld [vmem:[#allocation7 + $0x1e0] sm:$0xff] }
 0x108   : > { %2269 = vmatpush1.bf16.msra.mxu0 %v2268_v63  ;;  %v2294_v29 = vpack.c.bf16 %v594_v25, %v592_v24  ;;  %v593_v63 = vld [vmem:[#allocation7 + $0x1f0] sm:$0xff] }
 0x109   : > { %2229 = vmatpush1.bf16.msra.mxu1 %v2228_v6  ;;  %v569_v6 = vld [vmem:[#allocation7 + $0x130] sm:$0xff]  ;;  %2271 = vmatprep.subr.bf16.mxu0 %v2270_v36  ;;  %v2296_v36 = vpack.c.bf16 %v593_v63, %v591_v62  ;;  %v1082_v62 = vld [vmem:[#allocation8 + $0x28] sm:$0xff] }
 0x10a   : > { %2231 = vmatprep.subr.bf16.mxu1 %v2230_v31  ;;  %v572_v31 = vld [vmem:[#allocation7 + $0x148] sm:$0xff]  ;;  %v2272_v8 = vpack.c.bf16 %v569_v6, %v567_v30  ;;  %v1102_v30 = vld [vmem:[#allocation8 + $0xc0] sm:$0xff] }
 0x10b   : > { %v1103_v6 = vld [vmem:[#allocation8 + $0xc8] sm:$0xff] }
 0x10c   : > { %2273 = vmatpush1.bf16.msra.mxu0 %v2272_v8 }
 0x10d   : > { %2233 = vmatpush1.bf16.msra.mxu1 %v2232_v42  ;;  %v2274_v42 = vpack.c.bf16 %v574_v7, %v572_v31 }
 0x10f   : > { %2275 = vmatprep.subr.bf16.mxu0 %v2274_v42 }
 0x110   : > { %2277 = vmatpush1.bf16.msra.mxu0 %v2276_v2 }
 0x111   : > { %2279 = vmatprep.subr.bf16.mxu0 %v2278_v17 }
 0x114   : > { %2281 = vmatpush1.bf16.msra.mxu0 %v2280_v13 }
 0x115   : > { %2283 = vmatprep.subr.bf16.mxu0 %v2282_v14 }
 0x118   : > { %2285 = vmatpush1.bf16.msra.mxu0 %v2284_v4  ;;  %v1106_v4 = vld [vmem:[#allocation8 + $0xe0] sm:$0xff] }
 0x119   : > { %2287 = vmatprep.subr.bf16.mxu0 %v2286_v51 }
 0x11c   : > { %2289 = vmatpush1.bf16.msra.mxu0 %v2288_v54 }
 0x11d   : > { %2291 = vmatprep.subr.bf16.mxu0 %v2290_v57 }
 0x120   : > { %2293 = vmatpush1.bf16.msra.mxu0 %v2292_v60 }
 0x121   : > { %2295 = vmatprep.subr.bf16.mxu0 %v2294_v29  ;;  %v1110_v29 = vld [vmem:[#allocation8 + $0x100] sm:$0xff] }
 0x124   : > { %2297 = vmatpush1.bf16.msra.mxu0 %v2296_v36 }
 0x195   : > { %v739_v18 = vpop.f32.mrb[0].mxu0 }
 0x196   : > { %v741_v20 = vpop.f32.mrb[1].mxu0 }
 0x197   : > { %1004 = vmatprep.mubr.f32.mxu1 %v741_v20 }
 0x198   : > { %1005 = vmatmul.mubr.f32.vlgmr.msra.gmra.mrb[8].mxu1 %v739_v18 }
 0x199   : > { %v745_v21 = vpop.f32.mrb[2].mxu0 }
 0x19a   : > { %v747_v26 = vpop.f32.mrb[3].mxu0 }
 0x19b   : > { %1010 = vmatprep.mubr.f32.mxu1 %v747_v26  ;;  %v1078_v26 = vld [vmem:[#allocation8 + $0x8] sm:$0xff] }
 0x19c   : > { %1011 = vmatmul.mubr.f32.gmra.mrb[10].mxu1 %v745_v21  ;;  %v1107_v21 = vld [vmem:[#allocation8 + $0xe8] sm:$0xff] }
 0x19d   : > { %v751_v37 = vpop.f32.mrb[4].mxu0  ;;  %v828_v27 = vpop.f32.mrb[0].mxu1 }
 0x19e   : > { %v753_v44 = vpop.f32.mrb[5].mxu0  ;;  %v830_v49 = vpop.f32.mrb[1].mxu1 }
 0x19f   : > { %1016 = vmatprep.mubr.f32.mxu1 %v753_v44 }
 0x1a0   : > { %1017 = vmatmul.mubr.f32.gmra.mrb[12].mxu1 %v751_v37  ;;  %v1077_v37 = vld [vmem:[#allocation8] sm:$0xff] }
 0x1a1   : > { %v757_v50 = vpop.f32.mrb[6].mxu0  ;;  %v834_v1 = vpop.f32.mrb[2].mxu1 }
 0x1a2   : > { %v759_v5 = vpop.f32.mrb[7].mxu0  ;;  %v836_v16 = vpop.f32.mrb[3].mxu1 }
 0x1a3   : > { %1022 = vmatprep.mubr.f32.mxu1 %v759_v5 }
 0x1a4   : > { %1023 = vmatmul.mubr.f32.gmra.mrb[14].mxu1 %v757_v50 }
 0x1a5   : > { %1028 = vmatprep.mubr.f32.mxu1 %v830_v49  ;;  %v840_v33 = vpop.f32.mrb[4].mxu1 }
 0x1a6   : > { %v842_v34 = vpop.f32.mrb[5].mxu1 }
 0x1a7   : > { %v917_v35 = vpop.f32.mrb[8].mxu0 }
 0x1a8   : > { %1029 = vmatmul.mubr.f32.gmra.mrb[16].mxu1 %v828_v27  ;;  %v919_v39 = vpop.f32.mrb[9].mxu0 }
 0x1a9   : > { %1034 = vmatprep.mubr.f32.mxu1 %v836_v16  ;;  %v846_v38 = vpop.f32.mrb[6].mxu1 }
 0x1aa   : > { %v848_v40 = vpop.f32.mrb[7].mxu1 }
 0x1ab   : > { %v923_v41 = vpop.f32.mrb[10].mxu0 }
 0x1ac   : > { %1035 = vmatmul.mubr.f32.gmra.mrb[18].mxu1 %v834_v1  ;;  %v925_v22 = vpop.f32.mrb[11].mxu0 }
 0x1ad   : > { %1040 = vmatprep.mubr.f32.mxu1 %v842_v34 }
 0x1af   : > { %v929_v45 = vpop.f32.mrb[12].mxu0 }
 0x1b0   : > { %1041 = vmatmul.mubr.f32.gmra.mrb[20].mxu1 %v840_v33  ;;  %v931_v28 = vpop.f32.mrb[13].mxu0 }
 0x1b1   : > { %1046 = vmatprep.mubr.f32.mxu1 %v848_v40 }
 0x1b3   : > { %v935_v32 = vpop.f32.mrb[14].mxu0 }
 0x1b4   : > { %1047 = vmatmul.mubr.f32.gmra.mrb[22].mxu1 %v846_v38  ;;  %v937_v46 = vpop.f32.mrb[15].mxu0 }
 0x1b5   : > { %1052 = vmatprep.mubr.f32.mxu1 %v919_v39 }
 0x1b8   : > { %1053 = vmatmul.mubr.f32.gmra.mrb[24].mxu1 %v917_v35 }
 0x1b9   : > { %1058 = vmatprep.mubr.f32.mxu1 %v925_v22  ;;  %v1080_v22 = vld [vmem:[#allocation8 + $0x18] sm:$0xff] }
 0x1bc   : > { %1059 = vmatmul.mubr.f32.gmra.mrb[26].mxu1 %v923_v41  ;;  %v1108_v41 = vld [vmem:[#allocation8 + $0xf0] sm:$0xff] }
 0x1bd   : > { %1064 = vmatprep.mubr.f32.mxu1 %v931_v28 }
 0x1c0   : > { %1065 = vmatmul.mubr.f32.gmra.mrb[28].mxu1 %v929_v45 }
 0x1c1   : > { %1070 = vmatprep.mubr.f32.mxu1 %v937_v46  ;;  %v1109_v46 = vld [vmem:[#allocation8 + $0xf8] sm:$0xff] }
 0x1c4   : > { %1071 = vmatmul.mubr.f32.gmra.mrb[30].mxu1 %v935_v32 }
 0x1c5   : > { %1531 = vmatprep.mubr.f32.mxu1 %v2675_v0 }
 0x26b   : > { %v1006_v31 = vpop.f32.mrb[8].mxu1 }
 0x26c   : > { %v1126_v7 = vmul.f32 %v1102_v30, %v1006_v31  ;;  %v1008_v8 = vpop.f32.mrb[9].mxu1 }
 0x26d   : > { %v1127_v42 = vmul.f32 %v1103_v6, %v1008_v8  ;;  %v1111_v6 = vld [vmem:[#allocation8 + $0x108] sm:$0xff] }
 0x26e   : > { %v1174_v10 = vadd.f32 0.5, %v1126_v7  ;;  %v2090_v43 = vadd.f32 -0.5, %v1126_v7  ;;  %vm1150_vm1 = vcmp.ge.f32.partialorder %v1126_v7, 0.0 }
 0x26f   : > { %v1175_v2 = vadd.f32 0.5, %v1127_v42  ;;  %v2091_v17 = vadd.f32 -0.5, %v1127_v42  ;;  %v1012_v11 = vpop.f32.mrb[10].mxu1  ;;  %vm1151_vm2 = vcmp.ge.f32.partialorder %v1127_v42, 0.0 }
 0x270   : > { %v1198_v3 = vfloor.f32 %v1174_v10  ;;  %v1246_v9 = vceil.f32 %v2090_v43  ;;  %v1128_v12 = vmul.f32 %v1104_v23, %v1012_v11  ;;  %v1014_v13 = vpop.f32.mrb[11].mxu1  ;;  %v1081_v23 = vld [vmem:[#allocation8 + $0x20] sm:$0xff] }
 0x271   : > { %v1199_v14 = vfloor.f32 %v1175_v2  ;;  %v1247_v15 = vceil.f32 %v2091_v17  ;;  %v1129_v19 = vmul.f32 %v1105_v61, %v1014_v13  ;;  %v1112_v13 = vld [vmem:[#allocation8 + $0x110] sm:$0xff] }
 0x272   : > { %v1176_v18 = vadd.f32 0.5, %v1128_v12  ;;  %v2092_v20 = vadd.f32 -0.5, %v1128_v12  ;;  %v1270_v27 = vsel %vm1150_vm1, %v1198_v3, %v1246_v9  ;;  %vm1152_vm3 = vcmp.ge.f32.partialorder %v1128_v12, 0.0 }
 0x273   : > { %v1177_v44 = vadd.f32 0.5, %v1129_v19  ;;  %v2093_v49 = vadd.f32 -0.5, %v1129_v19  ;;  %v1018_v50 = vpop.f32.mrb[12].mxu1  ;;  %v1271_v34 = vsel %vm1151_vm2, %v1199_v14, %v1247_v15  ;;  %v1294_v45 = vmul.f32 %v1270_v27, %v1077_v37  ;;  %v1084_v14 = vld [vmem:[#allocation8 + $0x38] sm:$0xff]  ;;  %v1083_v27 = vld [vmem:[#allocation8 + $0x30] sm:$0xff] }
 0x274   : > { %v1200_v1 = vfloor.f32 %v1176_v18  ;;  %v1248_v5 = vceil.f32 %v2092_v20  ;;  %v1130_v16 = vmul.f32 %v1106_v4, %v1018_v50  ;;  %v1020_v33 = vpop.f32.mrb[13].mxu1  ;;  %v1295_v40 = vmul.f32 %v1271_v34, %v1078_v26  ;;  %v1113_v18 = vld [vmem:[#allocation8 + $0x118] sm:$0xff] }
 0x275   : > { %v1201_v35 = vfloor.f32 %v1177_v44  ;;  %v1249_v38 = vceil.f32 %v2093_v49  ;;  %v1131_v39 = vmul.f32 %v1107_v21, %v1020_v33  ;;  %vm1153_vm4 = vcmp.ge.f32.partialorder %v1129_v19, 0.0 }
 0x276   : > { %v1178_v28 = vadd.f32 0.5, %v1130_v16  ;;  %v2094_v32 = vadd.f32 -0.5, %v1130_v16  ;;  %1382 = vmatprep.mubr.f32.mxu0 %v1295_v40  ;;  %v1272_v54 = vsel %vm1152_vm3, %v1200_v1, %v1248_v5  ;;  %vm1154_vm5 = vcmp.ge.f32.partialorder %v1130_v16, 0.0 }
 0x277   : > { %v1179_v47 = vadd.f32 0.5, %v1131_v39  ;;  %v2095_v48 = vadd.f32 -0.5, %v1131_v39  ;;  %v1024_v51 = vpop.f32.mrb[14].mxu1  ;;  %v1273_v52 = vsel %vm1153_vm4, %v1201_v35, %v1249_v38  ;;  %1383 = vmatmul.mubr.f32.vlgmr.msra.gmra.mrb[16].mxu0 %v1294_v45  ;;  %vm1155_vm6 = vcmp.ge.f32.partialorder %v1131_v39, 0.0  ;;  %v1114_v38 = vld [vmem:[#allocation8 + $0x120] sm:$0xff]  ;;  %v1086_v39 = vld [vmem:[#allocation8 + $0x48] sm:$0xff] }
 0x278   : > { %v1202_v55 = vfloor.f32 %v1178_v28  ;;  %v1250_v56 = vceil.f32 %v2094_v32  ;;  %v1132_v57 = vmul.f32 %v1108_v41, %v1024_v51  ;;  %v1026_v58 = vpop.f32.mrb[15].mxu1  ;;  %v1297_v59 = vmul.f32 %v1273_v52, %v1080_v22  ;;  %v1115_v45 = vld [vmem:[#allocation8 + $0x128] sm:$0xff] }
 0x279   : > { %v1203_v60 = vfloor.f32 %v1179_v47  ;;  %v1251_v24 = vceil.f32 %v2095_v48  ;;  %v1133_v25 = vmul.f32 %v1109_v46, %v1026_v58  ;;  %v1296_v30 = vmul.f32 %v1272_v54, %v1079_v53  ;;  %v1085_v48 = vld [vmem:[#allocation8 + $0x40] sm:$0xff] }
 0x27a   : > { %v1180_v63 = vadd.f32 0.5, %v1132_v57  ;;  %v2096_v36 = vadd.f32 -0.5, %v1132_v57  ;;  %1388 = vmatprep.mubr.f32.mxu0 %v1297_v59  ;;  %v1274_v10 = vsel %vm1154_vm5, %v1202_v55, %v1250_v56  ;;  %vm1156_vm7 = vcmp.ge.f32.partialorder %v1132_v57, 0.0 }
 0x27b   : > { %v1181_v31 = vadd.f32 0.5, %v1133_v25  ;;  %v2097_v7 = vadd.f32 -0.5, %v1133_v25  ;;  %v1030_v8 = vpop.f32.mrb[16].mxu1  ;;  %v1275_v42 = vsel %vm1155_vm6, %v1203_v60, %v1251_v24  ;;  %1389 = vmatmul.mubr.f32.gmra.mrb[18].mxu0 %v1296_v30  ;;  %vm1157_vm8 = vcmp.ge.f32.partialorder %v1133_v25, 0.0  ;;  %v1116_v60 = vld [vmem:[#allocation8 + $0x130] sm:$0xff]  ;;  %v1088_v24 = vld [vmem:[#allocation8 + $0x58] sm:$0xff] }
 0x27c   : > { %v1204_v43 = vfloor.f32 %v1180_v63  ;;  %v1252_v61 = vceil.f32 %v2096_v36  ;;  %v1134_v2 = vmul.f32 %v1110_v29, %v1030_v8  ;;  %v1032_v17 = vpop.f32.mrb[17].mxu1  ;;  %v1299_v11 = vmul.f32 %v1275_v42, %v1082_v62  ;;  %v1117_v63 = vld [vmem:[#allocation8 + $0x138] sm:$0xff] }
 0x27d   : > { %v1205_v3 = vfloor.f32 %v1181_v31  ;;  %v1253_v9 = vceil.f32 %v2097_v7  ;;  %v1135_v12 = vmul.f32 %v1111_v6, %v1032_v17  ;;  %v1298_v4 = vmul.f32 %v1274_v10, %v1081_v23  ;;  %v1087_v7 = vld [vmem:[#allocation8 + $0x50] sm:$0xff] }
 0x27e   : > { %v1182_v15 = vadd.f32 0.5, %v1134_v2  ;;  %v2098_v19 = vadd.f32 -0.5, %v1134_v2  ;;  %1394 = vmatprep.mubr.f32.mxu0 %v1299_v11  ;;  %v1276_v44 = vsel %vm1156_vm7, %v1204_v43, %v1252_v61  ;;  %vm1158_vm9 = vcmp.ge.f32.partialorder %v1134_v2, 0.0 }
 0x27f   : > { %v1183_v20 = vadd.f32 0.5, %v1135_v12  ;;  %v2099_v21 = vadd.f32 -0.5, %v1135_v12  ;;  %v1036_v26 = vpop.f32.mrb[18].mxu1  ;;  %v1277_v37 = vsel %vm1157_vm8, %v1205_v3, %v1253_v9  ;;  %1395 = vmatmul.mubr.f32.gmra.mrb[20].mxu0 %v1298_v4  ;;  %vm1159_vm10 = vcmp.ge.f32.partialorder %v1135_v12, 0.0  ;;  %v1118_v3 = vld [vmem:[#allocation8 + $0x140] sm:$0xff]  ;;  %v1090_v9 = vld [vmem:[#allocation8 + $0x68] sm:$0xff] }
 0x280   : > { %v1206_v49 = vfloor.f32 %v1182_v15  ;;  %v1254_v50 = vceil.f32 %v2098_v19  ;;  %v1136_v1 = vmul.f32 %v1112_v13, %v1036_v26  ;;  %v1038_v5 = vpop.f32.mrb[19].mxu1  ;;  %v1301_v16 = vmul.f32 %v1277_v37, %v1084_v14  ;;  %v1119_v15 = vld [vmem:[#allocation8 + $0x148] sm:$0xff] }
 0x281   : > { %v1207_v33 = vfloor.f32 %v1183_v20  ;;  %v1255_v34 = vceil.f32 %v2099_v21  ;;  %v1137_v35 = vmul.f32 %v1113_v18, %v1038_v5  ;;  %v1300_v22 = vmul.f32 %v1276_v44, %v1083_v27  ;;  %v1089_v21 = vld [vmem:[#allocation8 + $0x60] sm:$0xff] }
 0x282   : > { %v1184_v40 = vadd.f32 0.5, %v1136_v1  ;;  %v2100_v41 = vadd.f32 -0.5, %v1136_v1  ;;  %1400 = vmatprep.mubr.f32.mxu0 %v1301_v16  ;;  %v1278_v51 = vsel %vm1158_vm9, %v1206_v49, %v1254_v50  ;;  %vm1160_vm11 = vcmp.ge.f32.partialorder %v1136_v1, 0.0 }
 0x283   : > { %v1185_v28 = vadd.f32 0.5, %v1137_v35  ;;  %v2101_v32 = vadd.f32 -0.5, %v1137_v35  ;;  %v1042_v46 = vpop.f32.mrb[20].mxu1  ;;  %v1279_v47 = vsel %vm1159_vm10, %v1207_v33, %v1255_v34  ;;  %1401 = vmatmul.mubr.f32.gmra.mrb[22].mxu0 %v1300_v22  ;;  %vm1161_vm12 = vcmp.ge.f32.partialorder %v1137_v35, 0.0  ;;  %v1120_v33 = vld [vmem:[#allocation8 + $0x150] sm:$0xff]  ;;  %v1092_v34 = vld [vmem:[#allocation8 + $0x78] sm:$0xff] }
 0x284   : > { %v1208_v52 = vfloor.f32 %v1184_v40  ;;  %v1256_v53 = vceil.f32 %v2100_v41  ;;  %v1138_v54 = vmul.f32 %v1114_v38, %v1042_v46  ;;  %v1303_v55 = vmul.f32 %v1279_v47, %v1086_v39  ;;  %v1044_v56 = vpop.f32.mrb[21].mxu1  ;;  %v1121_v40 = vld [vmem:[#allocation8 + $0x158] sm:$0xff] }
 0x285   : > { %v1209_v57 = vfloor.f32 %v1185_v28  ;;  %v1257_v58 = vceil.f32 %v2101_v32  ;;  %v1139_v59 = vmul.f32 %v1115_v45, %v1044_v56  ;;  %v1302_v62 = vmul.f32 %v1278_v51, %v1085_v48  ;;  %v1091_v32 = vld [vmem:[#allocation8 + $0x70] sm:$0xff] }
 0x286   : > { %v1186_v25 = vadd.f32 0.5, %v1138_v54  ;;  %v2102_v29 = vadd.f32 -0.5, %v1138_v54  ;;  %1406 = vmatprep.mubr.f32.mxu0 %v1303_v55  ;;  %v1280_v8 = vsel %vm1160_vm11, %v1208_v52, %v1256_v53  ;;  %vm1162_vm13 = vcmp.ge.f32.partialorder %v1138_v54, 0.0 }
 0x287   : > { %v1187_v36 = vadd.f32 0.5, %v1139_v59  ;;  %v2103_v30 = vadd.f32 -0.5, %v1139_v59  ;;  %v1048_v6 = vpop.f32.mrb[22].mxu1  ;;  %v1281_v31 = vsel %vm1161_vm12, %v1209_v57, %v1257_v58  ;;  %1407 = vmatmul.mubr.f32.gmra.mrb[24].mxu0 %v1302_v62  ;;  %vm1163_vm14 = vcmp.ge.f32.partialorder %v1139_v59, 0.0  ;;  %v1122_v57 = vld [vmem:[#allocation8 + $0x160] sm:$0xff]  ;;  %v1094_v58 = vld [vmem:[#allocation8 + $0x88] sm:$0xff] }
 0x288   : > { %v1210_v42 = vfloor.f32 %v1186_v25  ;;  %v1258_v23 = vceil.f32 %v2102_v29  ;;  %v1140_v10 = vmul.f32 %v1116_v60, %v1048_v6  ;;  %v1305_v43 = vmul.f32 %v1281_v31, %v1088_v24  ;;  %v1050_v61 = vpop.f32.mrb[23].mxu1  ;;  %v1123_v25 = vld [vmem:[#allocation8 + $0x168] sm:$0xff] }
 0x289   : > { %v1211_v2 = vfloor.f32 %v1187_v36  ;;  %v1259_v17 = vceil.f32 %v2103_v30  ;;  %v1141_v11 = vmul.f32 %v1117_v63, %v1050_v61  ;;  %v1304_v14 = vmul.f32 %v1280_v8, %v1087_v7  ;;  %v1093_v30 = vld [vmem:[#allocation8 + $0x80] sm:$0xff] }
 0x28a   : > { %v1188_v12 = vadd.f32 0.5, %v1140_v10  ;;  %v2104_v13 = vadd.f32 -0.5, %v1140_v10  ;;  %1412 = vmatprep.mubr.f32.mxu0 %v1305_v43  ;;  %v1282_v26 = vsel %vm1162_vm13, %v1210_v42, %v1258_v23  ;;  %vm1164_vm15 = vcmp.ge.f32.partialorder %v1140_v10, 0.0 }
 0x28b   : > { %v1189_v19 = vadd.f32 0.5, %v1141_v11  ;;  %v2105_v4 = vadd.f32 -0.5, %v1141_v11  ;;  %v1054_v18 = vpop.f32.mrb[24].mxu1  ;;  %v1283_v20 = vsel %vm1163_vm14, %v1211_v2, %v1259_v17  ;;  %1413 = vmatmul.mubr.f32.gmra.mrb[26].mxu0 %v1304_v14  ;;  %vm1165_vm1 = vcmp.ge.f32.partialorder %v1141_v11, 0.0  ;;  %v1124_v2 = vld [vmem:[#allocation8 + $0x170] sm:$0xff]  ;;  %v1096_v17 = vld [vmem:[#allocation8 + $0x98] sm:$0xff] }
 0x28c   : > { %v1212_v37 = vfloor.f32 %v1188_v12  ;;  %v1260_v27 = vceil.f32 %v2104_v13  ;;  %v1142_v44 = vmul.f32 %v1118_v3, %v1054_v18  ;;  %v1056_v49 = vpop.f32.mrb[25].mxu1  ;;  %v1307_v50 = vmul.f32 %v1283_v20, %v1090_v9  ;;  %v1125_v12 = vld [vmem:[#allocation8 + $0x178] sm:$0xff] }
 0x28d   : > { %v1213_v1 = vfloor.f32 %v1189_v19  ;;  %v1261_v5 = vceil.f32 %v2105_v4  ;;  %v1143_v16 = vmul.f32 %v1119_v15, %v1056_v49  ;;  %v1306_v39 = vmul.f32 %v1282_v26, %v1089_v21  ;;  %v1095_v4 = vld [vmem:[#allocation8 + $0x90] sm:$0xff] }
 0x28e   : > { %v1190_v35 = vadd.f32 0.5, %v1142_v44  ;;  %v2106_v38 = vadd.f32 -0.5, %v1142_v44  ;;  %1418 = vmatprep.mubr.f32.mxu0 %v1307_v50  ;;  %v1284_v46 = vsel %vm1164_vm15, %v1212_v37, %v1260_v27  ;;  %vm1166_vm2 = vcmp.ge.f32.partialorder %v1142_v44, 0.0 }
 0x28f   : > { %v1191_v41 = vadd.f32 0.5, %v1143_v16  ;;  %v2107_v22 = vadd.f32 -0.5, %v1143_v16  ;;  %v1060_v45 = vpop.f32.mrb[26].mxu1  ;;  %v1285_v28 = vsel %vm1165_vm1, %v1213_v1, %v1261_v5  ;;  %1419 = vmatmul.mubr.f32.gmra.mrb[28].mxu0 %v1306_v39  ;;  %vm1167_vm3 = vcmp.ge.f32.partialorder %v1143_v16, 0.0  ;;  %v1098_v1 = vld [vmem:[#allocation8 + $0xa8] sm:$0xff]  ;;  %v1097_v39 = vld [vmem:[#allocation8 + $0xa0] sm:$0xff] }
 0x290   : > { %v1214_v47 = vfloor.f32 %v1190_v35  ;;  %v1262_v48 = vceil.f32 %v2106_v38  ;;  %v1144_v51 = vmul.f32 %v1120_v33, %v1060_v45  ;;  %v1062_v52 = vpop.f32.mrb[27].mxu1  ;;  %v1309_v53 = vmul.f32 %v1285_v28, %v1092_v34 }
 0x291   : > { %v1215_v54 = vfloor.f32 %v1191_v41  ;;  %v1263_v55 = vceil.f32 %v2107_v22  ;;  %v1145_v56 = vmul.f32 %v1121_v40, %v1062_v52  ;;  %v1308_v24 = vmul.f32 %v1284_v46, %v1091_v32  ;;  %v1100_v46 = vld [vmem:[#allocation8 + $0xb8] sm:$0xff] }
 0x292   : > { %v1192_v59 = vadd.f32 0.5, %v1144_v51  ;;  %v2108_v60 = vadd.f32 -0.5, %v1144_v51  ;;  %1424 = vmatprep.mubr.f32.mxu0 %v1309_v53  ;;  %v1286_v6 = vsel %vm1166_vm2, %v1214_v47, %v1262_v48  ;;  %vm1168_vm4 = vcmp.ge.f32.partialorder %v1144_v51, 0.0  ;;  %v1099_v51 = vld [vmem:[#allocation8 + $0xb0] sm:$0xff] }
 0x293   : > { %v1193_v29 = vadd.f32 0.5, %v1145_v56  ;;  %v2109_v62 = vadd.f32 -0.5, %v1145_v56  ;;  %v1066_v63 = vpop.f32.mrb[28].mxu1  ;;  %v1287_v36 = vsel %vm1167_vm3, %v1215_v54, %v1263_v55  ;;  %1425 = vmatmul.mubr.f32.gmra.mrb[30].mxu0 %v1308_v24  ;;  %vm1169_vm5 = vcmp.ge.f32.partialorder %v1145_v56, 0.0 }
 0x294   : > { %v1216_v31 = vfloor.f32 %v1192_v59  ;;  %v1264_v7 = vceil.f32 %v2108_v60  ;;  %v1146_v8 = vmul.f32 %v1122_v57, %v1066_v63  ;;  %v1068_v42 = vpop.f32.mrb[29].mxu1  ;;  %v1311_v23 = vmul.f32 %v1287_v36, %v1094_v58 }
 0x295   : > { %v1217_v10 = vfloor.f32 %v1193_v29  ;;  %v1265_v43 = vceil.f32 %v2109_v62  ;;  %v1147_v61 = vmul.f32 %v1123_v25, %v1068_v42  ;;  %v1310_v9 = vmul.f32 %v1286_v6, %v1093_v30 }
 0x296   : > { %v1194_v11 = vadd.f32 0.5, %v1146_v8  ;;  %v2110_v3 = vadd.f32 -0.5, %v1146_v8  ;;  %1430 = vmatprep.mubr.f32.mxu0 %v1311_v23  ;;  %v1288_v18 = vsel %vm1168_vm4, %v1216_v31, %v1264_v7  ;;  %vm1170_vm6 = vcmp.ge.f32.partialorder %v1146_v8, 0.0  ;;  %v527_v31 = vld [vmem:[#allocation5 + $0x20] sm:$0xff]  ;;  %v528_v23 = vld [vmem:[#allocation5 + $0x28] sm:$0xff] }
 0x297   : > { %v1195_v13 = vadd.f32 0.5, %v1147_v61  ;;  %v2111_v14 = vadd.f32 -0.5, %v1147_v61  ;;  %v1072_v15 = vpop.f32.mrb[30].mxu1  ;;  %v1289_v19 = vsel %vm1169_vm5, %v1217_v10, %v1265_v43  ;;  %1431 = vmatmul.mubr.f32.gmra.mrb[32].mxu0 %v1310_v9  ;;  %vm1171_vm7 = vcmp.ge.f32.partialorder %v1147_v61, 0.0  ;;  %v530_v9 = vld [vmem:[#allocation5 + $0x38] sm:$0xff] }
 0x298   : > { %v1218_v20 = vfloor.f32 %v1194_v11  ;;  %v1266_v21 = vceil.f32 %v2110_v3  ;;  %v1148_v26 = vmul.f32 %v1124_v2, %v1072_v15  ;;  %v1074_v37 = vpop.f32.mrb[31].mxu1  ;;  %v1313_v27 = vmul.f32 %v1289_v19, %v1096_v17  ;;  %v529_v2 = vld [vmem:[#allocation5 + $0x30] sm:$0xff] }
 0x299   : > { %v1219_v44 = vfloor.f32 %v1195_v13  ;;  %v1267_v49 = vceil.f32 %v2111_v14  ;;  %v1149_v50 = vmul.f32 %v1125_v12, %v1074_v37  ;;  %v1312_v33 = vmul.f32 %v1288_v18, %v1095_v4 }
 0x29a   : > { %v1196_v5 = vadd.f32 0.5, %v1148_v26  ;;  %v2112_v16 = vadd.f32 -0.5, %v1148_v26  ;;  %1436 = vmatprep.mubr.f32.mxu0 %v1313_v27  ;;  %v1290_v40 = vsel %vm1170_vm6, %v1218_v20, %v1266_v21  ;;  %vm1172_vm8 = vcmp.ge.f32.partialorder %v1148_v26, 0.0 }
 0x29b   : > { %v1197_v34 = vadd.f32 0.5, %v1149_v50  ;;  %v2113_v35 = vadd.f32 -0.5, %v1149_v50  ;;  %v1291_v38 = vsel %vm1171_vm7, %v1219_v44, %v1267_v49  ;;  %1437 = vmatmul.mubr.f32.gmra.mrb[34].mxu0 %v1312_v33  ;;  %vm1173_vm9 = vcmp.ge.f32.partialorder %v1149_v50, 0.0 }
 0x29c   : > { %v1220_v41 = vfloor.f32 %v1196_v5  ;;  %v1268_v22 = vceil.f32 %v2112_v16  ;;  %v1315_v45 = vmul.f32 %v1291_v38, %v1098_v1  ;;  %v1314_v47 = vmul.f32 %v1290_v40, %v1097_v39 }
 0x29d   : > { %v1221_v28 = vfloor.f32 %v1197_v34  ;;  %v1269_v32 = vceil.f32 %v2113_v35 }
 0x29e   : > { %1442 = vmatprep.mubr.f32.mxu0 %v1315_v45  ;;  %v1292_v52 = vsel %vm1172_vm8, %v1220_v41, %v1268_v22 }
 0x29f   : > { %v1293_v48 = vsel %vm1173_vm9, %v1221_v28, %v1269_v32  ;;  %1443 = vmatmul.mubr.f32.gmra.mrb[36].mxu0 %v1314_v47  ;;  %v1316_v54 = vmul.f32 %v1292_v52, %v1099_v51 }
 0x2a0   : > { %v1317_v53 = vmul.f32 %v1293_v48, %v1100_v46 }
 0x2a2   : > { %1448 = vmatprep.mubr.f32.mxu0 %v1317_v53 }
 0x2a3   : > { %1449 = vmatmul.mubr.f32.gmra.mrb[38].mxu0 %v1316_v54 }
 0x2a4   : > { %1620 = vmatprep.mubr.f32.mxu0 %v2675_v0 }
 0x34a   : > { %v1384_v55 = vpop.f32.mrb[16].mxu0 }
 0x34b   : > { %v1386_v56 = vpop.f32.mrb[17].mxu0 }
 0x34e   : > { %v1390_v57 = vpop.f32.mrb[18].mxu0 }
 0x34f   : > { %v2300_v58 = vpack.c.bf16 %v1390_v57, %v1384_v55  ;;  %v1392_v59 = vpop.f32.mrb[19].mxu0 }
 0x350   : > { %v2298_v60 = vpack.c.bf16 %v1392_v59, %v1386_v56 }
 0x352   : > { %v1396_v24 = vpop.f32.mrb[20].mxu0  ;;  %2299 = vmatprep.subr.bf16.mxu1 %v2298_v60 }
 0x353   : > { %v1398_v25 = vpop.f32.mrb[21].mxu0  ;;  %2301 = vmatpush1.bf16.msra.mxu1 %v2300_v58 }
 0x356   : > { %v1402_v29 = vpop.f32.mrb[22].mxu0 }
 0x357   : > { %v2304_v62 = vpack.c.bf16 %v1402_v29, %v1396_v24  ;;  %v1404_v63 = vpop.f32.mrb[23].mxu0 }
 0x358   : > { %v2302_v36 = vpack.c.bf16 %v1404_v63, %v1398_v25 }
 0x35a   : > { %v1408_v30 = vpop.f32.mrb[24].mxu0  ;;  %2303 = vmatprep.subr.bf16.mxu1 %v2302_v36 }
 0x35b   : > { %v1410_v6 = vpop.f32.mrb[25].mxu0  ;;  %2305 = vmatpush1.bf16.msra.mxu1 %v2304_v62 }
 0x35e   : > { %v1414_v7 = vpop.f32.mrb[26].mxu0  ;;  %2114 = vmatmul.mubr.msk.f32.vlgmr.msra.gmra.mrb[32].mxu1 %vm660_vm0, %v527_v31 }
 0x35f   : > { %v2308_v8 = vpack.c.bf16 %v1414_v7, %v1408_v30  ;;  %v1416_v42 = vpop.f32.mrb[27].mxu0  ;;  %1537 = vmatprep.mubr.f32.mxu1 %v2675_v0 }
 0x360   : > { %v2306_v10 = vpack.c.bf16 %v1416_v42, %v1410_v6 }
 0x362   : > { %2307 = vmatprep.subr.bf16.mxu0 %v2306_v10  ;;  %v1420_v43 = vpop.f32.mrb[28].mxu0  ;;  %2115 = vmatmul.mubr.msk.f32.gmra.mrb[34].mxu1 %vm660_vm0, %v528_v23 }
 0x363   : > { %2309 = vmatpush1.bf16.msra.mxu0 %v2308_v8  ;;  %v1422_v61 = vpop.f32.mrb[29].mxu0  ;;  %1543 = vmatprep.mubr.f32.mxu1 %v2675_v0 }
 0x366   : > { %v1426_v17 = vpop.f32.mrb[30].mxu0  ;;  %2116 = vmatmul.mubr.msk.f32.gmra.mrb[36].mxu1 %vm660_vm0, %v529_v2 }
 0x367   : > { %v2312_v11 = vpack.c.bf16 %v1426_v17, %v1420_v43  ;;  %v1428_v3 = vpop.f32.mrb[31].mxu0  ;;  %1549 = vmatprep.mubr.f32.mxu1 %v2675_v0 }
 0x368   : > { %v2310_v12 = vpack.c.bf16 %v1428_v3, %v1422_v61 }
 0x36a   : > { %2311 = vmatprep.subr.bf16.mxu0 %v2310_v12  ;;  %v1432_v13 = vpop.f32.mrb[32].mxu0  ;;  %2117 = vmatmul.mubr.msk.f32.gmra.mrb[38].mxu1 %vm660_vm0, %v530_v9 }
 0x36b   : > { %2313 = vmatpush1.bf16.msra.mxu0 %v2312_v11  ;;  %v1434_v14 = vpop.f32.mrb[33].mxu0  ;;  %1709 = vmatprep.mubr.f32.mxu1 %v2675_v0 }
 0x36e   : > { %v1438_v15 = vpop.f32.mrb[34].mxu0  ;;  %2118 = vmatmul.mubr.msk.f32.vlgmr.msra.gmra.mrb[40].mxu0 %vm660_vm0, %v527_v31 }
 0x36f   : > { %v2316_v19 = vpack.c.bf16 %v1438_v15, %v1432_v13  ;;  %v1440_v4 = vpop.f32.mrb[35].mxu0  ;;  %1626 = vmatprep.mubr.f32.mxu0 %v2675_v0 }
 0x370   : > { %v2314_v18 = vpack.c.bf16 %v1440_v4, %v1434_v14 }
 0x372   : > { %2315 = vmatprep.subr.bf16.mxu1 %v2314_v18  ;;  %v1444_v20 = vpop.f32.mrb[36].mxu0  ;;  %2119 = vmatmul.mubr.msk.f32.gmra.mrb[42].mxu0 %vm660_vm0, %v528_v23 }
 0x373   : > { %2317 = vmatpush1.bf16.msra.mxu1 %v2316_v19  ;;  %v1446_v21 = vpop.f32.mrb[37].mxu0  ;;  %1632 = vmatprep.mubr.f32.mxu0 %v2675_v0 }
 0x376   : > { %v1450_v26 = vpop.f32.mrb[38].mxu0  ;;  %2120 = vmatmul.mubr.msk.f32.gmra.mrb[44].mxu0 %vm660_vm0, %v529_v2 }
 0x377   : > { %v2320_v37 = vpack.c.bf16 %v1450_v26, %v1444_v20  ;;  %v1452_v27 = vpop.f32.mrb[39].mxu0  ;;  %1638 = vmatprep.mubr.f32.mxu0 %v2675_v0 }
 0x378   : > { %v2318_v44 = vpack.c.bf16 %v1452_v27, %v1446_v21 }
 0x37a   : > { %2319 = vmatprep.subr.bf16.mxu1 %v2318_v44  ;;  %2121 = vmatmul.mubr.msk.f32.gmra.mrb[46].mxu0 %vm660_vm0, %v530_v9 }
 0x37b   : > { %2321 = vmatpush1.bf16.msra.mxu1 %v2320_v37 }
 0x37e   : > { %2122 = vmatmul.mubr.msk.f32.vlgmr.msra.gmra.mrb[40].mxu1 %vm660_vm0, %v527_v31 }
 0x37f   : > { %1715 = vmatprep.mubr.f32.mxu1 %v2675_v0 }
 0x382   : > { %2123 = vmatmul.mubr.msk.f32.gmra.mrb[42].mxu1 %vm660_vm0, %v528_v23 }
 0x383   : > { %1721 = vmatprep.mubr.f32.mxu1 %v2675_v0 }
 0x386   : > { %2124 = vmatmul.mubr.msk.f32.gmra.mrb[44].mxu1 %vm660_vm0, %v529_v2 }
 0x387   : > { %1727 = vmatprep.mubr.f32.mxu1 %v2675_v0 }
 0x38a   : > { %2125 = vmatmul.mubr.msk.f32.gmra.mrb[46].mxu1 %vm660_vm0, %v530_v9 }
 0x431   : > { %v1533_v49 = vpop.f32.mrb[32].mxu1 }
 0x432   : > { %v1535_v50 = vpop.f32.mrb[33].mxu1  ;;  %v3181_v38 = vadd.f32 128.0, %v1533_v49 }
 0x433   : > { %v3183_v39 = vadd.f32 128.0, %v1535_v50 }
 0x435   : > { %v1539_v1 = vpop.f32.mrb[34].mxu1 }
 0x436   : > { %v1541_v5 = vpop.f32.mrb[35].mxu1  ;;  %v3189_v32 = vadd.f32 128.0, %v1539_v1 }
 0x437   : > { %v3194_v48 = vadd.f32 128.0, %v1541_v5 }
 0x439   : > { %v1545_v16 = vpop.f32.mrb[36].mxu1 }
 0x43a   : > { %v1547_v33 = vpop.f32.mrb[37].mxu1  ;;  %v3201_v57 = vadd.f32 128.0, %v1545_v16 }
 0x43b   : > { %v3208_v62 = vadd.f32 128.0, %v1547_v33 }
 0x43d   : > { %v1551_v34 = vpop.f32.mrb[38].mxu1 }
 0x43e   : > { %v1553_v35 = vpop.f32.mrb[39].mxu1  ;;  %v3217_v2 = vadd.f32 128.0, %v1551_v34 }
 0x43f   : > { %v3226_v9 = vadd.f32 128.0, %v1553_v35 }
 0x441   : > { %v1622_v40 = vpop.f32.mrb[40].mxu0 }
 0x442   : > { %v3185_v41 = vmul.f32 0.344136, %v1622_v40  ;;  %v1798_v22 = vmul.f32 1.772, %v1622_v40  ;;  %v1624_v45 = vpop.f32.mrb[41].mxu0 }
 0x443   : > { %v3187_v0 = vmul.f32 0.344136, %v1624_v45  ;;  %v1799_v28 = vmul.f32 1.772, %v1624_v45 }
 0x444   : > { %v1766_v46 = vsub.f32 %v3181_v38, %v3185_v41  ;;  %v1806_v47 = vadd.f32 %v1798_v22, %v3181_v38 }
 0x445   : > { %v1767_v51 = vsub.f32 %v3183_v39, %v3187_v0  ;;  %v1807_v52 = vadd.f32 %v1799_v28, %v3183_v39  ;;  %v1628_v53 = vpop.f32.mrb[42].mxu0 }
 0x446   : > { %v1814_v54 = vmul.f32 0.003921569, %v1806_v47  ;;  %v3199_v55 = vmul.f32 0.344136, %v1628_v53  ;;  %v1800_v56 = vmul.f32 1.772, %v1628_v53 }
 0x447   : > { %v1815_v58 = vmul.f32 0.003921569, %v1807_v52  ;;  %v1630_v59 = vpop.f32.mrb[43].mxu0 }
 0x448   : > { %v1871_v60 = vmax.f32 %v1814_v54, 0.0  ;;  %v1768_v24 = vsub.f32 %v3189_v32, %v3199_v55  ;;  %v1808_v25 = vadd.f32 %v1800_v56, %v3189_v32  ;;  %v3206_v29 = vmul.f32 0.344136, %v1630_v59 }
 0x449   : > { %v1872_v63 = vmax.f32 %v1815_v58, 0.0  ;;  %v1801_v36 = vmul.f32 1.772, %v1630_v59  ;;  %v1634_v30 = vpop.f32.mrb[44].mxu0 }
 0x44a   : > { %v1879_v6 = vmin.f32 %v1871_v60, 1.0  ;;  %v1816_v31 = vmul.f32 0.003921569, %v1808_v25  ;;  %v1769_v7 = vsub.f32 %v3194_v48, %v3206_v29  ;;  %v3212_v8 = vmul.f32 0.344136, %v1634_v30  ;;  %v1636_v42 = vpop.f32.mrb[45].mxu0 }
 0x44b   : > { %v1880_v23 = vmin.f32 %v1872_v63, 1.0  ;;  %v1809_v10 = vadd.f32 %v1801_v36, %v3194_v48  ;;  %v1802_v43 = vmul.f32 1.772, %v1634_v30  ;;  %v3215_v61 = vmul.f32 0.344136, %v1636_v42 }
 0x44c   : > { %2134 = vst [vmem:[%s3221_s26 + $0x80] sm:$0xff] %v1879_v6  ;;  %v1873_v17 = vmax.f32 %v1816_v31, 0.0  ;;  %v1770_v11 = vsub.f32 %v3201_v57, %v3212_v8  ;;  %v1803_v3 = vmul.f32 1.772, %v1636_v42 }
 0x44d   : > { %2135 = vst [vmem:[%s3221_s26 + $0x88] sm:$0xff] %v1880_v23  ;;  %v1817_v12 = vmul.f32 0.003921569, %v1809_v10  ;;  %v1810_v13 = vadd.f32 %v1802_v43, %v3201_v57  ;;  %v1771_v14 = vsub.f32 %v3208_v62, %v3215_v61  ;;  %v1640_v15 = vpop.f32.mrb[46].mxu0 }
 0x44e   : > { %v1881_v19 = vmin.f32 %v1873_v17, 1.0  ;;  %v1811_v4 = vadd.f32 %v1803_v3, %v3208_v62  ;;  %v3233_v18 = vmul.f32 0.344136, %v1640_v15  ;;  %v1804_v20 = vmul.f32 1.772, %v1640_v15  ;;  %v1642_v21 = vpop.f32.mrb[47].mxu0 }
 0x44f   : > { %v1874_v26 = vmax.f32 %v1817_v12, 0.0  ;;  %v1818_v37 = vmul.f32 0.003921569, %v1810_v13  ;;  %v3235_v27 = vmul.f32 0.344136, %v1642_v21 }
 0x450   : > { %2136 = vst [vmem:[%s3221_s26 + $0x90] sm:$0xff] %v1881_v19  ;;  %v1819_v44 = vmul.f32 0.003921569, %v1811_v4  ;;  %v1772_v49 = vsub.f32 %v3217_v2, %v3233_v18  ;;  %v1812_v50 = vadd.f32 %v1804_v20, %v3217_v2  ;;  %v1805_v1 = vmul.f32 1.772, %v1642_v21 }
 0x451   : > { %v1711_v5 = vpop.f32.mrb[40].mxu1  ;;  %v1882_v16 = vmin.f32 %v1874_v26, 1.0  ;;  %v1875_v33 = vmax.f32 %v1818_v37, 0.0  ;;  %v1773_v34 = vsub.f32 %v3226_v9, %v3235_v27 }
 0x452   : > { %v1734_v35 = vmul.f32 1.402, %v1711_v5  ;;  %v1774_v40 = vmul.f32 0.714136, %v1711_v5  ;;  %v1713_v22 = vpop.f32.mrb[41].mxu1  ;;  %v1876_v45 = vmax.f32 %v1819_v44, 0.0  ;;  %v1813_v28 = vadd.f32 %v1805_v1, %v3226_v9 }
 0x453   : > { %v1735_v47 = vmul.f32 1.402, %v1713_v22  ;;  %v1775_v52 = vmul.f32 0.714136, %v1713_v22  ;;  %2137 = vst [vmem:[%s3221_s26 + $0x98] sm:$0xff] %v1882_v16  ;;  %v1883_v53 = vmin.f32 %v1875_v33, 1.0 }
 0x454   : > { %v1742_v54 = vadd.f32 %v1734_v35, %v3181_v38  ;;  %v1782_v56 = vsub.f32 %v1766_v46, %v1774_v40  ;;  %v1884_v58 = vmin.f32 %v1876_v45, 1.0  ;;  %v1820_v59 = vmul.f32 0.003921569, %v1812_v50 }
 0x455   : > { %v1743_v60 = vadd.f32 %v1735_v47, %v3183_v39  ;;  %v1783_v25 = vsub.f32 %v1767_v51, %v1775_v52  ;;  %v1717_v63 = vpop.f32.mrb[42].mxu1  ;;  %2138 = vst [vmem:[%s3221_s26 + $0xa0] sm:$0xff] %v1883_v53  ;;  %v3254_v36 = vmul.f32 0.003921569, %v1813_v28 }
 0x456   : > { %v1750_v30 = vmul.f32 0.003921569, %v1742_v54  ;;  %v1790_v6 = vmul.f32 0.003921569, %v1782_v56  ;;  %v1736_v31 = vmul.f32 1.402, %v1717_v63 }
 0x457   : > { %2139 = vst [vmem:[%s3221_s26 + $0xa8] sm:$0xff] %v1884_v58  ;;  %v1751_v42 = vmul.f32 0.003921569, %v1743_v60  ;;  %v1791_v23 = vmul.f32 0.003921569, %v1783_v25  ;;  %v1719_v43 = vpop.f32.mrb[43].mxu1 }
 0x458   : > { %v1776_v38 = vmul.f32 0.714136, %v1717_v63  ;;  %v1822_v41 = vmax.f32 %v1750_v30, 0.0  ;;  %v1846_v46 = vmax.f32 %v1790_v6, 0.0  ;;  %v1744_v10 = vadd.f32 %v1736_v31, %v3189_v32 }
 0x459   : > { %v1877_v17 = vmax.f32 %v1820_v59, 0.0  ;;  %v1823_v39 = vmax.f32 %v1751_v42, 0.0  ;;  %v1847_v0 = vmax.f32 %v1791_v23, 0.0  ;;  %v1737_v3 = vmul.f32 1.402, %v1719_v43  ;;  %v1723_v12 = vpop.f32.mrb[44].mxu1 }
 0x45a   : > { %v1784_v51 = vsub.f32 %v1768_v24, %v1776_v38  ;;  %v1830_v13 = vmin.f32 %v1822_v41, 1.0  ;;  %v1854_v15 = vmin.f32 %v1846_v46, 1.0  ;;  %v1752_v19 = vmul.f32 0.003921569, %v1744_v10  ;;  %v1725_v44 = vpop.f32.mrb[45].mxu1 }
 0x45b   : > { %v1777_v4 = vmul.f32 0.714136, %v1719_v43  ;;  %v1831_v20 = vmin.f32 %v1823_v39, 1.0  ;;  %v1855_v21 = vmin.f32 %v1847_v0, 1.0  ;;  %v1745_v37 = vadd.f32 %v1737_v3, %v3194_v48 }
 0x45c   : > { %v1792_v26 = vmul.f32 0.003921569, %v1784_v51  ;;  %1838 = vst [vmem:[%s3221_s26] sm:$0xff] %v1830_v13  ;;  %2126 = vst [vmem:[%s3221_s26 + $0x40] sm:$0xff] %v1854_v15  ;;  %v1824_v50 = vmax.f32 %v1752_v19, 0.0  ;;  %v1738_v55 = vmul.f32 1.402, %v1723_v12 }
 0x45d   : > { %v1785_v32 = vsub.f32 %v1769_v7, %v1777_v4  ;;  %v1778_v24 = vmul.f32 0.714136, %v1723_v12  ;;  %1839 = vst [vmem:[%s3221_s26 + $0x8] sm:$0xff] %v1831_v20  ;;  %2127 = vst [vmem:[%s3221_s26 + $0x48] sm:$0xff] %v1855_v21  ;;  %v1753_v5 = vmul.f32 0.003921569, %v1745_v37 }
 0x45e   : > { %v1848_v1 = vmax.f32 %v1792_v26, 0.0  ;;  %v1739_v16 = vmul.f32 1.402, %v1725_v44  ;;  %v1885_v33 = vmin.f32 %v1877_v17, 1.0  ;;  %v1832_v35 = vmin.f32 %v1824_v50, 1.0  ;;  %v1729_v29 = vpop.f32.mrb[46].mxu1 }
 0x45f   : > { %v1793_v40 = vmul.f32 0.003921569, %v1785_v32  ;;  %v1746_v22 = vadd.f32 %v1738_v55, %v3201_v57  ;;  %v1786_v48 = vsub.f32 %v1770_v11, %v1778_v24  ;;  %v1825_v45 = vmax.f32 %v1753_v5, 0.0  ;;  %v1731_v52 = vpop.f32.mrb[47].mxu1 }
 0x460   : > { %v1856_v7 = vmin.f32 %v1848_v1, 1.0  ;;  %v1747_v28 = vadd.f32 %v1739_v16, %v3208_v62  ;;  %v1779_v47 = vmul.f32 0.714136, %v1725_v44  ;;  %2140 = vst [vmem:[%s3221_s26 + $0xb0] sm:$0xff] %v1885_v33  ;;  %1840 = vst [vmem:[%s3221_s26 + $0x10] sm:$0xff] %v1832_v35  ;;  %v1878_v58 = vmax.f32 %v3254_v36, 0.0 }
 0x461   : > { %v1849_v53 = vmax.f32 %v1793_v40, 0.0  ;;  %v1754_v54 = vmul.f32 0.003921569, %v1746_v22  ;;  %v1794_v56 = vmul.f32 0.003921569, %v1786_v48  ;;  %v1833_v57 = vmin.f32 %v1825_v45, 1.0 }
 0x462   : > { %2128 = vst [vmem:[%s3221_s26 + $0x50] sm:$0xff] %v1856_v7  ;;  %v1755_v8 = vmul.f32 0.003921569, %v1747_v28  ;;  %v1787_v11 = vsub.f32 %v1771_v14, %v1779_v47  ;;  %v1740_v59 = vmul.f32 1.402, %v1729_v29  ;;  %v1886_v42 = vmin.f32 %v1878_v58, 1.0 }
 0x463   : > { %v1857_v60 = vmin.f32 %v1849_v53, 1.0  ;;  %v1826_v25 = vmax.f32 %v1754_v54, 0.0  ;;  %v1850_v63 = vmax.f32 %v1794_v56, 0.0  ;;  %v1780_v30 = vmul.f32 0.714136, %v1729_v29  ;;  %1841 = vst [vmem:[%s3221_s26 + $0x18] sm:$0xff] %v1833_v57 }
 0x464   : > { %v1795_v6 = vmul.f32 0.003921569, %v1787_v11  ;;  %v1827_v31 = vmax.f32 %v1755_v8, 0.0  ;;  %v1748_v36 = vadd.f32 %v1740_v59, %v3217_v2  ;;  %v1741_v23 = vmul.f32 1.402, %v1731_v52  ;;  %2141 = vst [vmem:[%s3221_s26 + $0xb8] sm:$0xff] %v1886_v42 }
 0x465   : > { %2129 = vst [vmem:[%s3221_s26 + $0x58] sm:$0xff] %v1857_v60  ;;  %v1834_v62 = vmin.f32 %v1826_v25, 1.0  ;;  %v1858_v61 = vmin.f32 %v1850_v63, 1.0  ;;  %v1788_v14 = vsub.f32 %v1772_v49, %v1780_v30  ;;  %v1781_v10 = vmul.f32 0.714136, %v1731_v52 }
 0x466   : > { %v1835_v38 = vmin.f32 %v1827_v31, 1.0  ;;  %v1851_v41 = vmax.f32 %v1795_v6, 0.0  ;;  %v1756_v46 = vmul.f32 0.003921569, %v1748_v36  ;;  %v1749_v17 = vadd.f32 %v1741_v23, %v3226_v9 }
 0x467   : > { %1842 = vst [vmem:[%s3221_s26 + $0x20] sm:$0xff] %v1834_v62  ;;  %2130 = vst [vmem:[%s3221_s26 + $0x60] sm:$0xff] %v1858_v61  ;;  %v1796_v43 = vmul.f32 0.003921569, %v1788_v14  ;;  %v1789_v18 = vsub.f32 %v1773_v34, %v1781_v10 }
 0x468   : > { %1843 = vst [vmem:[%s3221_s26 + $0x28] sm:$0xff] %v1835_v38  ;;  %v1859_v39 = vmin.f32 %v1851_v41, 1.0  ;;  %v1828_v2 = vmax.f32 %v1756_v46, 0.0  ;;  %v1757_v0 = vmul.f32 0.003921569, %v1749_v17 }
 0x469   : > { %v1852_v49 = vmax.f32 %v1796_v43, 0.0  ;;  %v1797_v3 = vmul.f32 0.003921569, %v1789_v18 }
 0x46a   : > { %2131 = vst [vmem:[%s3221_s26 + $0x68] sm:$0xff] %v1859_v39  ;;  %v1836_v51 = vmin.f32 %v1828_v2, 1.0  ;;  %v1829_v13 = vmax.f32 %v1757_v0, 0.0 }
 0x46b   : > { %v1860_v12 = vmin.f32 %v1852_v49, 1.0  ;;  %v1853_v15 = vmax.f32 %v1797_v3, 0.0 }
 0x46c   : > { %1844 = vst [vmem:[%s3221_s26 + $0x30] sm:$0xff] %v1836_v51  ;;  %v1837_v9 = vmin.f32 %v1829_v13, 1.0 }
 0x46d   : > { %2132 = vst [vmem:[%s3221_s26 + $0x70] sm:$0xff] %v1860_v12  ;;  %v1861_v27 = vmin.f32 %v1853_v15, 1.0 }
 0x46e   : > { %1845 = vst [vmem:[%s3221_s26 + $0x38] sm:$0xff] %v1837_v9 }
 0x46f   : > { %2133 = vst [vmem:[%s3221_s26 + $0x78] sm:$0xff] %v1861_v27 }
 0x470   : > { %2571 = shalt.err (!%p2568_p10)
}
 0x471   : > { %s2572_s27 = scalar_lea.hbm %s3306_s8, 3072  ;;  %s2576_s7 = scalar_lea.hbm %s3366_s4, 12288 }
 0x472   : > { %p2573_p13 = scmp.ne.s32.totalorder %s3306_s8, %s2572_s27  ;;  %p2577_p9 = scmp.lt.u32.totalorder %s3306_s8, %s3366_s4 }
 0x473   : > { %p2578_p8 = scmp.lt.u32.totalorder %s2576_s7, %s2572_s27  ;;  %p2580_p11 = scmp.lt.u32.totalorder %s2572_s27, %s3306_s8 }
 0x474   : > { %p2574_p0 = pnand %p2573_p13, %p3400_p5 }
 0x475   : > { %p2579_p1 = por %p2578_p8, %p2577_p9 }
 0x476   : > { %p2575_p4 = pneg %p2574_p0 }
 0x477   : > { %p2581_p3 = por %p2580_p11, %p2579_p1 }
 0x479   : > { %p2582_p7 = pnand %p2581_p3, %p2575_p4 }
 0x47b   : > { %2585 = shalt.err (!%p2582_p7)
}
 0x47c   : > { %s2677_s5 = smov 256   ;;  %s2678_s18 = smov 512  }
 0x47d   : > { %s2679_s22 = smov 16  }
 0x47e   : > { %2340 = dma.vmem_to_hbm [thread:$0]  (%p3400_p5), %s3300_s19, 3072, %s3306_s8, %s1897_s10, %s2677_s5, %s2678_s18, %s2679_s22  }
 0x47f PF: > { %s3401_s12 = sld [smem:[#allocation16_spill]]  ;;  %s3402_s1 = sld [smem:[#allocation15_spill]] }
 0x480   : > { %s3403_s25 = sld [smem:[#allocation17_spill]] }
 0x485   : > { %p2367_p12 = scmp.ge.s32.totalorder %s3401_s12, 2  ;;  %s1930_s23 = sand.u32 1, %s3402_s1  }
 0x486   : > { %p3404_p2 = scmp.ne.s32.totalorder %s3403_s25, 0  ;;  %s1931_s24 = scalar_lea.sflag [#allocation4], %s1930_s23 }
 0x488   : > { %p2357_p6 = pnand %p2367_p12, %p3404_p2 }
 0x48a   : > { %2631 = dma.done.wait (!%p2357_p6), %s1931_s24, 3072  }
 0x48b   : > { %2633 = vsyncadd (!%p2357_p6), %s1931_s24, 4294964224  ;;  %s22_s22 = sadd.s32 1, %s3401_s12   ;;  %s3405_s15 = smov %s2640_s16 }
 0x48c   : > { %p19_p10 = scmp.ge.s32.totalorder %s22_s22, 6   ;;  %s3406_s16 = smov %s2644_s17 }
 0x48d   : > { %s3407_s17 = smov %s2935_s9  ;;  %s3408_s18 = smov %s2656_s20 }
 0x48e   : > { %s3409_s19 = smov %s2660_s21  ;;  %s3410_s20 = smov %s3413_s30 }
 0x48f   : > { %s3411_s21 = smov %s3417_s6  ;;  %21 = sbr.rel (!%p19_p10) target bundleno = 11 (0xb), region = 100 }
 0x496   :  { %1936 = vsyncpa [#allocation3], 1 }
 0x497   :  { %1938 = vsyncpa [#allocation3 + $0x1], 1 }
 0x498   :  { %1939 = vsyncpa [#allocation6], 1 }
 0x499   :  { %1940 = vsyncpa [#allocation9], 1 }
 0x49a   :  { %1941 = vsyncpa [#allocation4], 1 }
 0x49b   :  { %1943 = vsyncpa [#allocation4 + $0x1], 1 }

</bundles_post_ra>
